<compile_context>
chip_gen: v6e
topology: v6e:2x2x1
jax: 0.10.0
libtpu: 0.0.40
codegen_flags: <defaults>
</compile_context>

<pallas_src>
import functools

import jax
import jax.numpy as jnp
from jax.experimental import pallas as pl
from jax.experimental.pallas import tpu as pltpu


def _round_up(v, m):
    return (v + m - 1) // m * m


# ------------------------------ kernel ------------------------------ #

def _branch_kernel(x_ref, w1_ref, w2_ref, w3_ref, b1_ref, b2_ref, b3_ref,
                   sel_ref, o_ref, *, H, W, matmul_dtype):
    """One batch element of the full branch, all lane-major (C, H*W).

    x_ref:   (1, Cin_p, HW)      flattened NCHW input (channels zero-padded)
    w1_ref:  (C1, 9*Cin_p)       bs1 weights (BN folded), K = tap-major
    w2_ref:  (C2, 7*C1)          bs2 weights, K = tap-major
    w3_ref:  (C3, 7*C2)          bs3 weights, K = tap-major
    b*_ref:  (C, 1)              folded conv-bias + BN shift (f32)
    sel_ref: (HW, Ho*Wo)         0/1 pool-selection matrix (f32)
    o_ref:   (1, C3, Ho*Wo)      channel-major pooled output (NCHW-flat)
    """
    HW = H * W
    md = matmul_dtype
    f32 = jnp.float32

    # Lane-index helpers: lane axis == flattened h*W + w.
    lanes = jax.lax.broadcasted_iota(jnp.int32, (1, HW), 1)
    if (W & (W - 1)) == 0:                       # power of two -> shift / and
        h_idx = jnp.right_shift(lanes, W.bit_length() - 1)
        w_idx = jnp.bitwise_and(lanes, W - 1)
    else:
        h_idx = lanes // W
        w_idx = lanes % W

    def shift_lanes(x, d):
        # y[..., i] = x[..., (i + d) mod HW]   (callers mask wrapped lanes)
        return pltpu.roll(x, (-d) % HW, x.ndim - 1) if d else x

    def tap(x, dh, dw):
        """Conv-tap operand: lane hw holds x[:, (h+dh)*W + (w+dw)], 0 if OOB."""
        if dh == 0 and dw == 0:
            return x
        y = shift_lanes(x, dh * W + dw)
        conds = []
        if dh > 0:
            conds.append(h_idx < H - dh)
        if dh < 0:
            conds.append(h_idx >= -dh)
        if dw > 0:
            conds.append(w_idx < W - dw)
        if dw < 0:
            conds.append(w_idx >= -dw)
        valid = conds[0]
        for c in conds[1:]:
            valid = jnp.logical_and(valid, c)
        return jnp.where(valid, y, jnp.zeros((), y.dtype))

    # ---- bs1: 3x3 conv as ONE K=9*Cin_p matmul (im2col built in VMEM) ----
    x0 = x_ref[0].astype(f32)                                     # (Cin_p, HW)
    patches = jnp.concatenate(
        [tap(x0, kh - 1, kw - 1) for kh in range(3) for kw in range(3)], axis=0)
    a1 = jnp.dot(w1_ref[...], patches.astype(md), preferred_element_type=f32)
    a1 = jnp.maximum(a1 + b1_ref[...], 0.0)                       # (C1, HW)

    # ---- bs2: 7x1 conv as ONE K=7*C1 matmul (H shifts = lane rolls by W) ----
    op2 = jnp.concatenate([tap(a1, t - 3, 0) for t in range(7)], axis=0)
    a2 = jnp.dot(w2_ref[...], op2.astype(md), preferred_element_type=f32)
    a2 = jnp.maximum(a2 + b2_ref[...], 0.0)                       # (C2, HW)

    # ---- bs3: 1x7 conv as ONE K=7*C2 matmul (W shifts = lane rolls by 1) ----
    op3 = jnp.concatenate([tap(a2, 0, t - 3) for t in range(7)], axis=0)
    a3 = jnp.dot(w3_ref[...], op3.astype(md), preferred_element_type=f32)
    a3 = jnp.maximum(a3 + b3_ref[...], 0.0)                       # (C3, HW)

    # ---- 2x2/2 max pool: two lane rolls + one 0/1 selection matmul ----
    hp = jnp.maximum(a3, shift_lanes(a3, W))   # rows h, h+1 (wrapped lanes never selected)
    wp = jnp.maximum(hp, shift_lanes(hp, 1))   # cols w, w+1
    o_ref[0] = jnp.dot(wp, sel_ref[...], preferred_element_type=f32)  # (C3, Ho*Wo)


# ------------------------------ wrapper ------------------------------ #

def cnn_branch_forward(x_nchw, params, *, matmul_dtype=jnp.float32):
    n, cin, h, w = x_nchw.shape
    assert h % 2 == 0 and w % 2 == 0
    hw = h * w
    ho, wo = h // 2, w // 2
    p1, p2, p3 = params
    c1, c2, c3 = p1["w"].shape[-1], p2["w"].shape[-1], p3["w"].shape[-1]
    cin_p = _round_up(cin, 8)
    md = matmul_dtype

    # NCHW -> (N, Cin, H*W) is a free reshape (no transpose); pad channels to a
    # sublane multiple so the in-kernel im2col concat stays tile-aligned.
    x_flat = jnp.pad(x_nchw.reshape(n, cin, hw),
                     ((0, 0), (0, cin_p - cin), (0, 0)))

    # BN-folded weights, transposed to (Cout, K) for the lane-major matmuls.
    w1t = jnp.pad(p1["w"], ((0, 0), (0, cin_p - cin), (0, 0))) \
             .reshape(9 * cin_p, c1).T.astype(md)                 # (c1, 9*cin_p)
    w2t = p2["w"].reshape(7 * c1, c2).T.astype(md)                # (c2, 7*c1)
    w3t = p3["w"].reshape(7 * c2, c3).T.astype(md)                # (c3, 7*c2)
    b1 = p1["bias"].reshape(c1, 1).astype(jnp.float32)
    b2 = p2["bias"].reshape(c2, 1).astype(jnp.float32)
    b3 = p3["bias"].reshape(c3, 1).astype(jnp.float32)

    # 0/1 matrix compacting the 2x2-max'd hw lanes down to the Ho*Wo lanes.
    o_idx = jnp.arange(ho * wo, dtype=jnp.int32)
    src = 2 * (o_idx // wo) * w + 2 * (o_idx % wo)
    sel = (jnp.arange(hw, dtype=jnp.int32)[:, None] == src[None, :]
           ).astype(jnp.float32)                                  # (hw, ho*wo)

    kernel = functools.partial(_branch_kernel, H=h, W=w, matmul_dtype=md)
    out = pl.pallas_call(
        kernel,
        out_shape=jax.ShapeDtypeStruct((n, c3, ho * wo), jnp.float32),
        grid_spec=pltpu.PrefetchScalarGridSpec(
            num_scalar_prefetch=0,
            grid=(n,),                              # batch -> 2 TCs on v7x
            in_specs=[
                pl.BlockSpec((1, cin_p, hw), lambda b: (b, 0, 0)),
                pl.BlockSpec((c1, 9 * cin_p), lambda b: (0, 0)),
                pl.BlockSpec((c2, 7 * c1), lambda b: (0, 0)),
                pl.BlockSpec((c3, 7 * c2), lambda b: (0, 0)),
                pl.BlockSpec((c1, 1), lambda b: (0, 0)),
                pl.BlockSpec((c2, 1), lambda b: (0, 0)),
                pl.BlockSpec((c3, 1), lambda b: (0, 0)),
                pl.BlockSpec((hw, ho * wo), lambda b: (0, 0)),
            ],
            out_specs=pl.BlockSpec((1, c3, ho * wo), lambda b: (b, 0, 0)),
        ),
        compiler_params=pltpu.CompilerParams(dimension_semantics=("parallel",)),
    )(x_flat, w1t, w2t, w3t, b1, b2, b3, sel)

    # nn.Dropout(0.2) is identity at inference time.
    # TODO(synk): training-mode stochastic dropout masking not implemented.
    return out.reshape(n, c3, ho, wo)               # channel-major -> free NCHW


# ------------------------ parameters / reference ------------------------ #

def _make_layer(key, kh, kw, cin, cout):
    """Synthetic params mirroring cnn_basic shapes.  BatchNorm uses its
    PyTorch-default init (gamma=1, beta=0, mean=0, var=1, eps=1e-6) and is
    folded, together with the conv bias, into the weights / bias."""
    kw_key, kb_key = jax.random.split(key)
    wgt = jax.random.normal(kw_key, (kh * kw, cin, cout), jnp.float32) * 0.2
    b = jax.random.normal(kb_key, (cout,), jnp.float32) * 0.1
    eps = 1e-6
    gamma = jnp.ones((cout,), jnp.float32)
    beta = jnp.zeros((cout,), jnp.float32)
    r_mean = jnp.zeros((cout,), jnp.float32)
    r_var = jnp.ones((cout,), jnp.float32)
    bn_scale = gamma / jnp.sqrt(r_var + eps)
    return dict(w=wgt * bn_scale[None, None, :],
                bias=(b - r_mean) * bn_scale + beta,
                kh=kh, kw=kw)


def init_params(key):
    k1, k2, k3 = jax.random.split(key, 3)
    return [
        _make_layer(k1, 3, 3, 3, 32),    # bs1
        _make_layer(k2, 7, 1, 32, 48),   # bs2
        _make_layer(k3, 1, 7, 48, 48),   # bs3
    ]


def _reference_forward(x_nchw, params, matmul_dtype=jnp.float32):
    """Pure-JAX reference.  When matmul_dtype != f32, conv operands are rounded
    through that dtype so the bf16 kernel path can be checked apples-to-apples."""
    x = jnp.transpose(x_nchw, (0, 2, 3, 1)).astype(jnp.float32)
    for p in params:
        kh, kw = p["kh"], p["kw"]
        cin, cout = x.shape[-1], p["w"].shape[-1]
        w_hwio = p["w"].reshape(kh, kw, cin, cout)
        xin = x
        if matmul_dtype != jnp.float32:
            xin = xin.astype(matmul_dtype).astype(jnp.float32)
            w_hwio = w_hwio.astype(matmul_dtype).astype(jnp.float32)
        y = jax.lax.conv_general_dilated(
            xin, w_hwio, window_strides=(1, 1),
            padding=(((kh - 1) // 2, (kh - 1) // 2),
                     ((kw - 1) // 2, (kw - 1) // 2)),
            dimension_numbers=("NHWC", "HWIO", "NHWC"),
            precision=jax.lax.Precision.HIGHEST)
        x = jnp.maximum(y + p["bias"].reshape(1, 1, 1, cout), 0.0)
    x = jax.lax.reduce_window(x, -jnp.inf, jax.lax.max,
                              (1, 2, 2, 1), (1, 2, 2, 1), "VALID")
    return jnp.transpose(x, (0, 3, 1, 2))


if __name__ == "__main__":
    key = jax.random.PRNGKey(0)
    kx, kp = jax.random.split(key)
    x = jax.random.normal(kx, (2, 3, 16, 16), jnp.float32)   # NCHW, like PyTorch
    params = init_params(kp)

    # f32 matmul path (reference-accurate on all of v5e / v6e / v7x).
    fwd = jax.jit(functools.partial(cnn_branch_forward, matmul_dtype=jnp.float32))
    out = jax.block_until_ready(fwd(x, params))
    assert out.shape == (2, 48, 8, 8), out.shape
    ref = jax.block_until_ready(_reference_forward(x, params))
    max_err = float(jnp.max(jnp.abs(out - ref)))
    assert jnp.allclose(out, ref, rtol=2e-3, atol=2e-3), max_err

    # bf16-operand path (v6e/v7x MXU-native), checked against a reference whose
    # conv operands are rounded through bf16 the same way.
    fwd16 = jax.jit(functools.partial(cnn_branch_forward, matmul_dtype=jnp.bfloat16))
    out16 = jax.block_until_ready(fwd16(x, params))
    ref16 = jax.block_until_ready(_reference_forward(x, params, jnp.bfloat16))
    max_err16 = float(jnp.max(jnp.abs(out16 - ref16)))
    assert jnp.allclose(out16, ref16, rtol=3e-2, atol=3e-2), max_err16

    print("KERNEL_OK")
</pallas_src>

<mosaic_0001>
module attributes {stable_mosaic.version = 11 : i64} {
  func.func @_branch_kernel(%arg0: i32, %arg1: memref<1x8x256xf32, #tpu.memory_space<vmem>>, %arg2: memref<32x72xf32, #tpu.memory_space<vmem>>, %arg3: memref<48x224xf32, #tpu.memory_space<vmem>>, %arg4: memref<48x336xf32, #tpu.memory_space<vmem>>, %arg5: memref<32x1xf32, #tpu.memory_space<vmem>>, %arg6: memref<48x1xf32, #tpu.memory_space<vmem>>, %arg7: memref<48x1xf32, #tpu.memory_space<vmem>>, %arg8: memref<256x64xf32, #tpu.memory_space<vmem>>, %arg9: memref<1x48x64xf32, #tpu.memory_space<vmem>>) attributes {dimension_semantics = [#tpu.dimension_semantics<parallel>], iteration_bounds = array<i64: 2>, scalar_prefetch = 0 : i64, scratch_operands = 0 : i64, tpu.core_type = #tpu.core_type<tc>, window_params = [{transform_indices = @transform_0, window_bounds = array<i64: 1, 8, 256>}, {pipeline_mode = #tpu.pipeline_mode<synchronous>, transform_indices = @transform_1, window_bounds = array<i64: 32, 72>}, {pipeline_mode = #tpu.pipeline_mode<synchronous>, transform_indices = @transform_2, window_bounds = array<i64: 48, 224>}, {pipeline_mode = #tpu.pipeline_mode<synchronous>, transform_indices = @transform_3, window_bounds = array<i64: 48, 336>}, {pipeline_mode = #tpu.pipeline_mode<synchronous>, transform_indices = @transform_4, window_bounds = array<i64: 32, 1>}, {pipeline_mode = #tpu.pipeline_mode<synchronous>, transform_indices = @transform_5, window_bounds = array<i64: 48, 1>}, {pipeline_mode = #tpu.pipeline_mode<synchronous>, transform_indices = @transform_6, window_bounds = array<i64: 48, 1>}, {pipeline_mode = #tpu.pipeline_mode<synchronous>, transform_indices = @transform_7, window_bounds = array<i64: 256, 64>}, {transform_indices = @transform_8, window_bounds = array<i64: 1, 48, 64>}]} {
    %0 = tpu.iota {dimensions = array<i32: 1>} : vector<1x256xi32>
    %c4_i32 = arith.constant 4 : i32
    %1 = vector.broadcast %c4_i32 : i32 to vector<1x256xi32>
    %2 = arith.shrsi %0, %1 : vector<1x256xi32>
    %c15_i32 = arith.constant 15 : i32
    %3 = vector.broadcast %c15_i32 : i32 to vector<1x256xi32>
    %4 = arith.andi %0, %3 : vector<1x256xi32>
    %c0 = arith.constant 0 : index
    %c0_0 = arith.constant 0 : index
    %c0_1 = arith.constant 0 : index
    %5 = vector.load %arg1[%c0, %c0_0, %c0_1] : memref<1x8x256xf32, #tpu.memory_space<vmem>>, vector<1x8x256xf32>
    %6 = vector.shape_cast %5 : vector<1x8x256xf32> to vector<8x256xf32>
    %c17_i32 = arith.constant 17 : i32
    %7 = tpu.dynamic_rotate %6 by %c17_i32 dim 1 : vector<8x256xf32>, i32 -> vector<8x256xf32>
    %c1_i32 = arith.constant 1 : i32
    %8 = vector.broadcast %c1_i32 : i32 to vector<1x256xi32>
    %9 = arith.cmpi sge, %2, %8 : vector<1x256xi32>
    %c1_i32_2 = arith.constant 1 : i32
    %10 = vector.broadcast %c1_i32_2 : i32 to vector<1x256xi32>
    %11 = arith.cmpi sge, %4, %10 : vector<1x256xi32>
    %12 = arith.andi %9, %11 : vector<1x256xi1>
    %cst = arith.constant 0.000000e+00 : f32
    %13 = vector.shape_cast %12 : vector<1x256xi1> to vector<1x256xi1>
    %14 = vector.broadcast %13 : vector<1x256xi1> to vector<8x256xi1>
    %15 = vector.broadcast %cst : f32 to vector<8x256xf32>
    %16 = arith.select %14, %7, %15 : vector<8x256xi1>, vector<8x256xf32>
    %c16_i32 = arith.constant 16 : i32
    %17 = tpu.dynamic_rotate %6 by %c16_i32 dim 1 : vector<8x256xf32>, i32 -> vector<8x256xf32>
    %c1_i32_3 = arith.constant 1 : i32
    %18 = vector.broadcast %c1_i32_3 : i32 to vector<1x256xi32>
    %19 = arith.cmpi sge, %2, %18 : vector<1x256xi32>
    %cst_4 = arith.constant 0.000000e+00 : f32
    %20 = vector.shape_cast %19 : vector<1x256xi1> to vector<1x256xi1>
    %21 = vector.broadcast %20 : vector<1x256xi1> to vector<8x256xi1>
    %22 = vector.broadcast %cst_4 : f32 to vector<8x256xf32>
    %23 = arith.select %21, %17, %22 : vector<8x256xi1>, vector<8x256xf32>
    %c15_i32_5 = arith.constant 15 : i32
    %24 = tpu.dynamic_rotate %6 by %c15_i32_5 dim 1 : vector<8x256xf32>, i32 -> vector<8x256xf32>
    %c1_i32_6 = arith.constant 1 : i32
    %25 = vector.broadcast %c1_i32_6 : i32 to vector<1x256xi32>
    %26 = arith.cmpi sge, %2, %25 : vector<1x256xi32>
    %c15_i32_7 = arith.constant 15 : i32
    %27 = vector.broadcast %c15_i32_7 : i32 to vector<1x256xi32>
    %28 = arith.cmpi slt, %4, %27 : vector<1x256xi32>
    %29 = arith.andi %26, %28 : vector<1x256xi1>
    %cst_8 = arith.constant 0.000000e+00 : f32
    %30 = vector.shape_cast %29 : vector<1x256xi1> to vector<1x256xi1>
    %31 = vector.broadcast %30 : vector<1x256xi1> to vector<8x256xi1>
    %32 = vector.broadcast %cst_8 : f32 to vector<8x256xf32>
    %33 = arith.select %31, %24, %32 : vector<8x256xi1>, vector<8x256xf32>
    %c1_i32_9 = arith.constant 1 : i32
    %34 = tpu.dynamic_rotate %6 by %c1_i32_9 dim 1 : vector<8x256xf32>, i32 -> vector<8x256xf32>
    %c1_i32_10 = arith.constant 1 : i32
    %35 = vector.broadcast %c1_i32_10 : i32 to vector<1x256xi32>
    %36 = arith.cmpi sge, %4, %35 : vector<1x256xi32>
    %cst_11 = arith.constant 0.000000e+00 : f32
    %37 = vector.shape_cast %36 : vector<1x256xi1> to vector<1x256xi1>
    %38 = vector.broadcast %37 : vector<1x256xi1> to vector<8x256xi1>
    %39 = vector.broadcast %cst_11 : f32 to vector<8x256xf32>
    %40 = arith.select %38, %34, %39 : vector<8x256xi1>, vector<8x256xf32>
    %c255_i32 = arith.constant 255 : i32
    %41 = tpu.dynamic_rotate %6 by %c255_i32 dim 1 : vector<8x256xf32>, i32 -> vector<8x256xf32>
    %c15_i32_12 = arith.constant 15 : i32
    %42 = vector.broadcast %c15_i32_12 : i32 to vector<1x256xi32>
    %43 = arith.cmpi slt, %4, %42 : vector<1x256xi32>
    %cst_13 = arith.constant 0.000000e+00 : f32
    %44 = vector.shape_cast %43 : vector<1x256xi1> to vector<1x256xi1>
    %45 = vector.broadcast %44 : vector<1x256xi1> to vector<8x256xi1>
    %46 = vector.broadcast %cst_13 : f32 to vector<8x256xf32>
    %47 = arith.select %45, %41, %46 : vector<8x256xi1>, vector<8x256xf32>
    %c241_i32 = arith.constant 241 : i32
    %48 = tpu.dynamic_rotate %6 by %c241_i32 dim 1 : vector<8x256xf32>, i32 -> vector<8x256xf32>
    %c15_i32_14 = arith.constant 15 : i32
    %49 = vector.broadcast %c15_i32_14 : i32 to vector<1x256xi32>
    %50 = arith.cmpi slt, %2, %49 : vector<1x256xi32>
    %c1_i32_15 = arith.constant 1 : i32
    %51 = vector.broadcast %c1_i32_15 : i32 to vector<1x256xi32>
    %52 = arith.cmpi sge, %4, %51 : vector<1x256xi32>
    %53 = arith.andi %50, %52 : vector<1x256xi1>
    %cst_16 = arith.constant 0.000000e+00 : f32
    %54 = vector.shape_cast %53 : vector<1x256xi1> to vector<1x256xi1>
    %55 = vector.broadcast %54 : vector<1x256xi1> to vector<8x256xi1>
    %56 = vector.broadcast %cst_16 : f32 to vector<8x256xf32>
    %57 = arith.select %55, %48, %56 : vector<8x256xi1>, vector<8x256xf32>
    %c240_i32 = arith.constant 240 : i32
    %58 = tpu.dynamic_rotate %6 by %c240_i32 dim 1 : vector<8x256xf32>, i32 -> vector<8x256xf32>
    %c15_i32_17 = arith.constant 15 : i32
    %59 = vector.broadcast %c15_i32_17 : i32 to vector<1x256xi32>
    %60 = arith.cmpi slt, %2, %59 : vector<1x256xi32>
    %cst_18 = arith.constant 0.000000e+00 : f32
    %61 = vector.shape_cast %60 : vector<1x256xi1> to vector<1x256xi1>
    %62 = vector.broadcast %61 : vector<1x256xi1> to vector<8x256xi1>
    %63 = vector.broadcast %cst_18 : f32 to vector<8x256xf32>
    %64 = arith.select %62, %58, %63 : vector<8x256xi1>, vector<8x256xf32>
    %c239_i32 = arith.constant 239 : i32
    %65 = tpu.dynamic_rotate %6 by %c239_i32 dim 1 : vector<8x256xf32>, i32 -> vector<8x256xf32>
    %c15_i32_19 = arith.constant 15 : i32
    %66 = vector.broadcast %c15_i32_19 : i32 to vector<1x256xi32>
    %67 = arith.cmpi slt, %2, %66 : vector<1x256xi32>
    %c15_i32_20 = arith.constant 15 : i32
    %68 = vector.broadcast %c15_i32_20 : i32 to vector<1x256xi32>
    %69 = arith.cmpi slt, %4, %68 : vector<1x256xi32>
    %70 = arith.andi %67, %69 : vector<1x256xi1>
    %cst_21 = arith.constant 0.000000e+00 : f32
    %71 = vector.shape_cast %70 : vector<1x256xi1> to vector<1x256xi1>
    %72 = vector.broadcast %71 : vector<1x256xi1> to vector<8x256xi1>
    %73 = vector.broadcast %cst_21 : f32 to vector<8x256xf32>
    %74 = arith.select %72, %65, %73 : vector<8x256xi1>, vector<8x256xf32>
    %75 = tpu.concatenate %16, %23, %33, %40, %6, %47, %57, %64, %74 in 0 : vector<8x256xf32>, vector<8x256xf32>, vector<8x256xf32>, vector<8x256xf32>, vector<8x256xf32>, vector<8x256xf32>, vector<8x256xf32>, vector<8x256xf32>, vector<8x256xf32> -> vector<72x256xf32>
    %c0_22 = arith.constant 0 : index
    %c0_23 = arith.constant 0 : index
    %76 = vector.load %arg2[%c0_22, %c0_23] : memref<32x72xf32, #tpu.memory_space<vmem>>, vector<32x72xf32>
    %cst_24 = arith.constant dense<0.000000e+00> : vector<32x256xf32>
    %77 = tpu.matmul %76, %75, %cst_24 {dimension_numbers = #tpu.dot_dimension_numbers<[1], [0], [0], [1], [0, 0, 1, 1], [], []>} : vector<32x72xf32>, vector<72x256xf32>, vector<32x256xf32> -> vector<32x256xf32>
    %c0_25 = arith.constant 0 : index
    %c0_26 = arith.constant 0 : index
    %78 = vector.load %arg5[%c0_25, %c0_26] : memref<32x1xf32, #tpu.memory_space<vmem>>, vector<32x1xf32>
    %79 = vector.broadcast %78 : vector<32x1xf32> to vector<32x256xf32>
    %80 = arith.addf %77, %79 : vector<32x256xf32>
    %cst_27 = arith.constant 0.000000e+00 : f32
    %81 = vector.broadcast %cst_27 : f32 to vector<32x256xf32>
    %82 = arith.maximumf %80, %81 : vector<32x256xf32>
    %c48_i32 = arith.constant 48 : i32
    %83 = tpu.dynamic_rotate %82 by %c48_i32 dim 1 : vector<32x256xf32>, i32 -> vector<32x256xf32>
    %c3_i32 = arith.constant 3 : i32
    %84 = vector.broadcast %c3_i32 : i32 to vector<1x256xi32>
    %85 = arith.cmpi sge, %2, %84 : vector<1x256xi32>
    %cst_28 = arith.constant 0.000000e+00 : f32
    %86 = vector.shape_cast %85 : vector<1x256xi1> to vector<1x256xi1>
    %87 = vector.broadcast %86 : vector<1x256xi1> to vector<32x256xi1>
    %88 = vector.broadcast %cst_28 : f32 to vector<32x256xf32>
    %89 = arith.select %87, %83, %88 : vector<32x256xi1>, vector<32x256xf32>
    %c32_i32 = arith.constant 32 : i32
    %90 = tpu.dynamic_rotate %82 by %c32_i32 dim 1 : vector<32x256xf32>, i32 -> vector<32x256xf32>
    %c2_i32 = arith.constant 2 : i32
    %91 = vector.broadcast %c2_i32 : i32 to vector<1x256xi32>
    %92 = arith.cmpi sge, %2, %91 : vector<1x256xi32>
    %cst_29 = arith.constant 0.000000e+00 : f32
    %93 = vector.shape_cast %92 : vector<1x256xi1> to vector<1x256xi1>
    %94 = vector.broadcast %93 : vector<1x256xi1> to vector<32x256xi1>
    %95 = vector.broadcast %cst_29 : f32 to vector<32x256xf32>
    %96 = arith.select %94, %90, %95 : vector<32x256xi1>, vector<32x256xf32>
    %c16_i32_30 = arith.constant 16 : i32
    %97 = tpu.dynamic_rotate %82 by %c16_i32_30 dim 1 : vector<32x256xf32>, i32 -> vector<32x256xf32>
    %c1_i32_31 = arith.constant 1 : i32
    %98 = vector.broadcast %c1_i32_31 : i32 to vector<1x256xi32>
    %99 = arith.cmpi sge, %2, %98 : vector<1x256xi32>
    %cst_32 = arith.constant 0.000000e+00 : f32
    %100 = vector.shape_cast %99 : vector<1x256xi1> to vector<1x256xi1>
    %101 = vector.broadcast %100 : vector<1x256xi1> to vector<32x256xi1>
    %102 = vector.broadcast %cst_32 : f32 to vector<32x256xf32>
    %103 = arith.select %101, %97, %102 : vector<32x256xi1>, vector<32x256xf32>
    %c240_i32_33 = arith.constant 240 : i32
    %104 = tpu.dynamic_rotate %82 by %c240_i32_33 dim 1 : vector<32x256xf32>, i32 -> vector<32x256xf32>
    %c15_i32_34 = arith.constant 15 : i32
    %105 = vector.broadcast %c15_i32_34 : i32 to vector<1x256xi32>
    %106 = arith.cmpi slt, %2, %105 : vector<1x256xi32>
    %cst_35 = arith.constant 0.000000e+00 : f32
    %107 = vector.shape_cast %106 : vector<1x256xi1> to vector<1x256xi1>
    %108 = vector.broadcast %107 : vector<1x256xi1> to vector<32x256xi1>
    %109 = vector.broadcast %cst_35 : f32 to vector<32x256xf32>
    %110 = arith.select %108, %104, %109 : vector<32x256xi1>, vector<32x256xf32>
    %c224_i32 = arith.constant 224 : i32
    %111 = tpu.dynamic_rotate %82 by %c224_i32 dim 1 : vector<32x256xf32>, i32 -> vector<32x256xf32>
    %c14_i32 = arith.constant 14 : i32
    %112 = vector.broadcast %c14_i32 : i32 to vector<1x256xi32>
    %113 = arith.cmpi slt, %2, %112 : vector<1x256xi32>
    %cst_36 = arith.constant 0.000000e+00 : f32
    %114 = vector.shape_cast %113 : vector<1x256xi1> to vector<1x256xi1>
    %115 = vector.broadcast %114 : vector<1x256xi1> to vector<32x256xi1>
    %116 = vector.broadcast %cst_36 : f32 to vector<32x256xf32>
    %117 = arith.select %115, %111, %116 : vector<32x256xi1>, vector<32x256xf32>
    %c208_i32 = arith.constant 208 : i32
    %118 = tpu.dynamic_rotate %82 by %c208_i32 dim 1 : vector<32x256xf32>, i32 -> vector<32x256xf32>
    %c13_i32 = arith.constant 13 : i32
    %119 = vector.broadcast %c13_i32 : i32 to vector<1x256xi32>
    %120 = arith.cmpi slt, %2, %119 : vector<1x256xi32>
    %cst_37 = arith.constant 0.000000e+00 : f32
    %121 = vector.shape_cast %120 : vector<1x256xi1> to vector<1x256xi1>
    %122 = vector.broadcast %121 : vector<1x256xi1> to vector<32x256xi1>
    %123 = vector.broadcast %cst_37 : f32 to vector<32x256xf32>
    %124 = arith.select %122, %118, %123 : vector<32x256xi1>, vector<32x256xf32>
    %125 = tpu.concatenate %89, %96, %103, %82, %110, %117, %124 in 0 : vector<32x256xf32>, vector<32x256xf32>, vector<32x256xf32>, vector<32x256xf32>, vector<32x256xf32>, vector<32x256xf32>, vector<32x256xf32> -> vector<224x256xf32>
    %c0_38 = arith.constant 0 : index
    %c0_39 = arith.constant 0 : index
    %126 = vector.load %arg3[%c0_38, %c0_39] : memref<48x224xf32, #tpu.memory_space<vmem>>, vector<48x224xf32>
    %cst_40 = arith.constant dense<0.000000e+00> : vector<48x256xf32>
    %127 = tpu.matmul %126, %125, %cst_40 {dimension_numbers = #tpu.dot_dimension_numbers<[1], [0], [0], [1], [0, 0, 1, 1], [], []>} : vector<48x224xf32>, vector<224x256xf32>, vector<48x256xf32> -> vector<48x256xf32>
    %c0_41 = arith.constant 0 : index
    %c0_42 = arith.constant 0 : index
    %128 = vector.load %arg6[%c0_41, %c0_42] : memref<48x1xf32, #tpu.memory_space<vmem>>, vector<48x1xf32>
    %129 = vector.broadcast %128 : vector<48x1xf32> to vector<48x256xf32>
    %130 = arith.addf %127, %129 : vector<48x256xf32>
    %cst_43 = arith.constant 0.000000e+00 : f32
    %131 = vector.broadcast %cst_43 : f32 to vector<48x256xf32>
    %132 = arith.maximumf %130, %131 : vector<48x256xf32>
    %c3_i32_44 = arith.constant 3 : i32
    %133 = tpu.dynamic_rotate %132 by %c3_i32_44 dim 1 : vector<48x256xf32>, i32 -> vector<48x256xf32>
    %c3_i32_45 = arith.constant 3 : i32
    %134 = vector.broadcast %c3_i32_45 : i32 to vector<1x256xi32>
    %135 = arith.cmpi sge, %4, %134 : vector<1x256xi32>
    %cst_46 = arith.constant 0.000000e+00 : f32
    %136 = vector.shape_cast %135 : vector<1x256xi1> to vector<1x256xi1>
    %137 = vector.broadcast %136 : vector<1x256xi1> to vector<48x256xi1>
    %138 = vector.broadcast %cst_46 : f32 to vector<48x256xf32>
    %139 = arith.select %137, %133, %138 : vector<48x256xi1>, vector<48x256xf32>
    %c2_i32_47 = arith.constant 2 : i32
    %140 = tpu.dynamic_rotate %132 by %c2_i32_47 dim 1 : vector<48x256xf32>, i32 -> vector<48x256xf32>
    %c2_i32_48 = arith.constant 2 : i32
    %141 = vector.broadcast %c2_i32_48 : i32 to vector<1x256xi32>
    %142 = arith.cmpi sge, %4, %141 : vector<1x256xi32>
    %cst_49 = arith.constant 0.000000e+00 : f32
    %143 = vector.shape_cast %142 : vector<1x256xi1> to vector<1x256xi1>
    %144 = vector.broadcast %143 : vector<1x256xi1> to vector<48x256xi1>
    %145 = vector.broadcast %cst_49 : f32 to vector<48x256xf32>
    %146 = arith.select %144, %140, %145 : vector<48x256xi1>, vector<48x256xf32>
    %c1_i32_50 = arith.constant 1 : i32
    %147 = tpu.dynamic_rotate %132 by %c1_i32_50 dim 1 : vector<48x256xf32>, i32 -> vector<48x256xf32>
    %c1_i32_51 = arith.constant 1 : i32
    %148 = vector.broadcast %c1_i32_51 : i32 to vector<1x256xi32>
    %149 = arith.cmpi sge, %4, %148 : vector<1x256xi32>
    %cst_52 = arith.constant 0.000000e+00 : f32
    %150 = vector.shape_cast %149 : vector<1x256xi1> to vector<1x256xi1>
    %151 = vector.broadcast %150 : vector<1x256xi1> to vector<48x256xi1>
    %152 = vector.broadcast %cst_52 : f32 to vector<48x256xf32>
    %153 = arith.select %151, %147, %152 : vector<48x256xi1>, vector<48x256xf32>
    %c255_i32_53 = arith.constant 255 : i32
    %154 = tpu.dynamic_rotate %132 by %c255_i32_53 dim 1 : vector<48x256xf32>, i32 -> vector<48x256xf32>
    %c15_i32_54 = arith.constant 15 : i32
    %155 = vector.broadcast %c15_i32_54 : i32 to vector<1x256xi32>
    %156 = arith.cmpi slt, %4, %155 : vector<1x256xi32>
    %cst_55 = arith.constant 0.000000e+00 : f32
    %157 = vector.shape_cast %156 : vector<1x256xi1> to vector<1x256xi1>
    %158 = vector.broadcast %157 : vector<1x256xi1> to vector<48x256xi1>
    %159 = vector.broadcast %cst_55 : f32 to vector<48x256xf32>
    %160 = arith.select %158, %154, %159 : vector<48x256xi1>, vector<48x256xf32>
    %c254_i32 = arith.constant 254 : i32
    %161 = tpu.dynamic_rotate %132 by %c254_i32 dim 1 : vector<48x256xf32>, i32 -> vector<48x256xf32>
    %c14_i32_56 = arith.constant 14 : i32
    %162 = vector.broadcast %c14_i32_56 : i32 to vector<1x256xi32>
    %163 = arith.cmpi slt, %4, %162 : vector<1x256xi32>
    %cst_57 = arith.constant 0.000000e+00 : f32
    %164 = vector.shape_cast %163 : vector<1x256xi1> to vector<1x256xi1>
    %165 = vector.broadcast %164 : vector<1x256xi1> to vector<48x256xi1>
    %166 = vector.broadcast %cst_57 : f32 to vector<48x256xf32>
    %167 = arith.select %165, %161, %166 : vector<48x256xi1>, vector<48x256xf32>
    %c253_i32 = arith.constant 253 : i32
    %168 = tpu.dynamic_rotate %132 by %c253_i32 dim 1 : vector<48x256xf32>, i32 -> vector<48x256xf32>
    %c13_i32_58 = arith.constant 13 : i32
    %169 = vector.broadcast %c13_i32_58 : i32 to vector<1x256xi32>
    %170 = arith.cmpi slt, %4, %169 : vector<1x256xi32>
    %cst_59 = arith.constant 0.000000e+00 : f32
    %171 = vector.shape_cast %170 : vector<1x256xi1> to vector<1x256xi1>
    %172 = vector.broadcast %171 : vector<1x256xi1> to vector<48x256xi1>
    %173 = vector.broadcast %cst_59 : f32 to vector<48x256xf32>
    %174 = arith.select %172, %168, %173 : vector<48x256xi1>, vector<48x256xf32>
    %175 = tpu.concatenate %139, %146, %153, %132, %160, %167, %174 in 0 : vector<48x256xf32>, vector<48x256xf32>, vector<48x256xf32>, vector<48x256xf32>, vector<48x256xf32>, vector<48x256xf32>, vector<48x256xf32> -> vector<336x256xf32>
    %c0_60 = arith.constant 0 : index
    %c0_61 = arith.constant 0 : index
    %176 = vector.load %arg4[%c0_60, %c0_61] : memref<48x336xf32, #tpu.memory_space<vmem>>, vector<48x336xf32>
    %cst_62 = arith.constant dense<0.000000e+00> : vector<48x256xf32>
    %177 = tpu.matmul %176, %175, %cst_62 {dimension_numbers = #tpu.dot_dimension_numbers<[1], [0], [0], [1], [0, 0, 1, 1], [], []>} : vector<48x336xf32>, vector<336x256xf32>, vector<48x256xf32> -> vector<48x256xf32>
    %c0_63 = arith.constant 0 : index
    %c0_64 = arith.constant 0 : index
    %178 = vector.load %arg7[%c0_63, %c0_64] : memref<48x1xf32, #tpu.memory_space<vmem>>, vector<48x1xf32>
    %179 = vector.broadcast %178 : vector<48x1xf32> to vector<48x256xf32>
    %180 = arith.addf %177, %179 : vector<48x256xf32>
    %cst_65 = arith.constant 0.000000e+00 : f32
    %181 = vector.broadcast %cst_65 : f32 to vector<48x256xf32>
    %182 = arith.maximumf %180, %181 : vector<48x256xf32>
    %c240_i32_66 = arith.constant 240 : i32
    %183 = tpu.dynamic_rotate %182 by %c240_i32_66 dim 1 : vector<48x256xf32>, i32 -> vector<48x256xf32>
    %184 = arith.maximumf %182, %183 : vector<48x256xf32>
    %c255_i32_67 = arith.constant 255 : i32
    %185 = tpu.dynamic_rotate %184 by %c255_i32_67 dim 1 : vector<48x256xf32>, i32 -> vector<48x256xf32>
    %186 = arith.maximumf %184, %185 : vector<48x256xf32>
    %c0_68 = arith.constant 0 : index
    %c0_69 = arith.constant 0 : index
    %187 = vector.load %arg8[%c0_68, %c0_69] : memref<256x64xf32, #tpu.memory_space<vmem>>, vector<256x64xf32>
    %cst_70 = arith.constant dense<0.000000e+00> : vector<48x64xf32>
    %188 = tpu.matmul %186, %187, %cst_70 {dimension_numbers = #tpu.dot_dimension_numbers<[1], [0], [0], [1], [0, 0, 1, 1], [], []>} : vector<48x256xf32>, vector<256x64xf32>, vector<48x64xf32> -> vector<48x64xf32>
    %c0_71 = arith.constant 0 : index
    %c0_72 = arith.constant 0 : index
    %c0_73 = arith.constant 0 : index
    %189 = vector.load %arg9[%c0_71, %c0_72, %c0_73] : memref<1x48x64xf32, #tpu.memory_space<vmem>>, vector<1x48x64xf32>
    %190 = vector.shape_cast %189 : vector<1x48x64xf32> to vector<48x64xf32>
    %191 = vector.shape_cast %188 : vector<48x64xf32> to vector<1x48x64xf32>
    tpu.vector_store %arg9[%c0_71, %c0_72, %c0_73], %191 {strides = array<i32>} : memref<1x48x64xf32, #tpu.memory_space<vmem>>, vector<1x48x64xf32>,
    return
  }
  func.func @transform_0(%arg0: i32) -> (i32, i32, i32) {
    %c0_i32 = arith.constant 0 : i32
    %c0_i32_0 = arith.constant 0 : i32
    %c0_i32_1 = arith.constant 0 : i32
    return %arg0, %c0_i32, %c0_i32_0 : i32, i32, i32
  }
  func.func @transform_1(%arg0: i32) -> (i32, i32) {
    %c0_i32 = arith.constant 0 : i32
    %c0_i32_0 = arith.constant 0 : i32
    %c0_i32_1 = arith.constant 0 : i32
    return %c0_i32, %c0_i32_0 : i32, i32
  }
  func.func @transform_2(%arg0: i32) -> (i32, i32) {
    %c0_i32 = arith.constant 0 : i32
    %c0_i32_0 = arith.constant 0 : i32
    %c0_i32_1 = arith.constant 0 : i32
    return %c0_i32, %c0_i32_0 : i32, i32
  }
  func.func @transform_3(%arg0: i32) -> (i32, i32) {
    %c0_i32 = arith.constant 0 : i32
    %c0_i32_0 = arith.constant 0 : i32
    %c0_i32_1 = arith.constant 0 : i32
    return %c0_i32, %c0_i32_0 : i32, i32
  }
  func.func @transform_4(%arg0: i32) -> (i32, i32) {
    %c0_i32 = arith.constant 0 : i32
    %c0_i32_0 = arith.constant 0 : i32
    %c0_i32_1 = arith.constant 0 : i32
    return %c0_i32, %c0_i32_0 : i32, i32
  }
  func.func @transform_5(%arg0: i32) -> (i32, i32) {
    %c0_i32 = arith.constant 0 : i32
    %c0_i32_0 = arith.constant 0 : i32
    %c0_i32_1 = arith.constant 0 : i32
    return %c0_i32, %c0_i32_0 : i32, i32
  }
  func.func @transform_6(%arg0: i32) -> (i32, i32) {
    %c0_i32 = arith.constant 0 : i32
    %c0_i32_0 = arith.constant 0 : i32
    %c0_i32_1 = arith.constant 0 : i32
    return %c0_i32, %c0_i32_0 : i32, i32
  }
  func.func @transform_7(%arg0: i32) -> (i32, i32) {
    %c0_i32 = arith.constant 0 : i32
    %c0_i32_0 = arith.constant 0 : i32
    %c0_i32_1 = arith.constant 0 : i32
    return %c0_i32, %c0_i32_0 : i32, i32
  }
  func.func @transform_8(%arg0: i32) -> (i32, i32, i32) {
    %c0_i32 = arith.constant 0 : i32
    %c0_i32_0 = arith.constant 0 : i32
    %c0_i32_1 = arith.constant 0 : i32
    return %arg0, %c0_i32, %c0_i32_0 : i32, i32, i32
  }
}

</mosaic_0001>

<bundles_post_ra>
// kernel: cnn_branch_forward.1
= control target key start
LH: loop header
LB: loop body
LE: loop exit
PB: predicated region body
PF: predicated region fallthrough
CT: control target
= control target key end

     0   :  { %s2266_s27 = smov 0   ;;  %s3732_s0 = inlined_call_operand.vmem [shape: f32[2,8,256], index: 0, kind: input, shape index: {}]   ;;  %s3733_s1 = inlined_call_operand.vmem [shape: f32[32,72], index: 1, kind: input, shape index: {}]   ;;  %s3734_s2 = inlined_call_operand.vmem [shape: f32[48,224], index: 2, kind: input, shape index: {}]   ;;  %s3735_s3 = inlined_call_operand.vmem [shape: f32[48,336], index: 3, kind: input, shape index: {}]   ;;  %s3736_s4 = inlined_call_operand.vmem [shape: f32[32,1], index: 4, kind: input, shape index: {}]   ;;  %s3737_s5 = inlined_call_operand.vmem [shape: f32[48,1], index: 5, kind: input, shape index: {}]   ;;  %s3738_s6 = inlined_call_operand.vmem [shape: f32[48,1], index: 6, kind: input, shape index: {}]   ;;  %s3739_s7 = inlined_call_operand.vmem [shape: f32[256,64], index: 7, kind: input, shape index: {}]   ;;  %s3740_s8 = inlined_call_operand.vmem [shape: f32[2,48,64], index: 8, kind: output, shape index: {}]  }
   0x1 LB: > { %s1861_s28 = sadd.s32 4294967295, %s2201_s27   ;;  %p1865_p0 = scmp.ge.s32.totalorder %s2201_s27, 1  ;;  %s2201_s27 = sphi %s2266_s27, %s18_s27  }
   0x2   : > { %p262_p1 = scmp.lt.s32.totalorder %s2201_s27, 3 }
   0x4   : > { %p263_p2 = pnand %p1865_p0, %p262_p1 }
   0x5   : > { %p296_p3 = scmp.lt.s32.totalorder (!%p263_p2), %s1861_s28, 1  ;;  %s2203_s11 = smov (!%p263_p2), 112  }
   0x6   : > { %266 = sbr.rel (%p263_p2) target bundleno = 1691 (0x69b), region = 52  ;;  %s2204_s12 = smov (!%p263_p2), 111  }
   0x7   : > { %s2205_s13 = smov (!%p263_p2), 113   ;;  %s2206_s14 = smov (!%p263_p2), 127  }
   0x8   : > { %s2207_s15 = smov (!%p263_p2), 1   ;;  %s2209_s16 = smov (!%p263_p2), 15  }
   0x9   : > { %s2210_s17 = smov (!%p263_p2), 16   ;;  %s2211_s18 = smov (!%p263_p2), 17  }
   0xa   : > { %s2213_s19 = smov (!%p263_p2), 32   ;;  %s2214_s20 = smov (!%p263_p2), 48  }
   0xb   : > { %s3742_s28 = smov (!%p296_p3, %s1861_s28), 1  ;;  %v2208_v2 = vmov 0.0   ;;  %v442_v3 = vld [vmem:[%s3736_s4 + $0x18] sm:$0xff]  ;;  %v441_v4 = vld [vmem:[%s3736_s4 + $0x10] sm:$0xff]  ;;  %v2212_v5 = vmov 0   ;;  %v439_v6 = vld [vmem:[%s3736_s4] sm:$0xff]  ;;  %v306_v8 = vlaneseq }
   0xc   : > { %s2023_s29 = sshll.u32 %s3742_s28, 4  ;;  %540 = vmatprep.mubr.f32.mxu0 %v2208_v2  ;;  %2133 = vset.pattern.permute.xlu0 %v2212_v5  ;;  %v440_v7 = vld [vmem:[%s3736_s4 + $0x8] sm:$0xff]  ;;  %v435_v47 = vld [vmem:[%s3733_s1] sm:$0xff]  ;;  %v437_v49 = vld [vmem:[%s3733_s1 + $0x10] sm:$0xff]  ;;  %s2215_s21 = smov 80  }
   0xd   : > { %s300_s10 = scalar_lea.vmem %s3732_s0, %s2023_s29  ;;  %2134 = vset.pattern.permute.xlu1 %v2212_v5  ;;  %v2321_v9 = vand.u32 127, %v306_v8  ;;  %v436_v48 = vld [vmem:[%s3733_s1 + $0x8] sm:$0xff]  ;;  %v438_v50 = vld [vmem:[%s3733_s1 + $0x18] sm:$0xff]  ;;  %s2216_s22 = smov 96  }
   0xe   : > { %v2280_v0 = vld [vmem:[%s300_s10] sm:$0xff]  ;;  %v2285_v1 = vld [vmem:[%s300_s10 + $0x8] sm:$0xff]  ;;  %s2217_s24 = smov 2   ;;  %s2218_s25 = smov 3  }
   0xf   : > { %407 = vrot.lane.b32.xlu1 %v2280_v0, %s2203_s11  ;;  %420 = vrot.lane.b32.xlu0 %v2280_v0, %s2204_s12  ;;  %v308_v10 = vadd.s32 128, %v2321_v9  ;;  %v2329_v13 = vshra.s32 %v2321_v9, 4  ;;  %v2332_v14 = vand.u32 15, %v2321_v9  ;;  %vm424_vm4 = vcmp.lt.s32.totalorder %v2321_v9, 111  ;;  %s2219_s26 = smov 126   ;;  %s2220_s29 = smov 125  }
  0x10   : > { %vm411_vm7 = vcmp.lt.s32.totalorder %v2321_v9, 112  ;;  %vm394_vm10 = vcmp.lt.s32.totalorder %v2321_v9, 113  ;;  %vm381_vm13 = vcmp.lt.s32.totalorder %v2321_v9, 127  ;;  %vm368_vm14 = vcmp.lt.s32.totalorder %v2321_v9, 1 }
  0x11   : > { %v2324_v11 = vshra.s32 %v308_v10, 4  ;;  %v2326_v12 = vand.u32 15, %v308_v10  ;;  %vm354_vm2 = vcmp.lt.s32.totalorder %v2332_v14, 15  ;;  %vm397_vm3 = vcmp.lt.s32.totalorder %v2329_v13, 15 }
  0x12   : > { %vm427_vm6 = vmand %vm397_vm3, %vm354_vm2  ;;  %vm324_vm9 = vcmp.ge.s32.totalorder %v2332_v14, 1 }
  0x13   : > { %409 = vrot.lane.b32.xlu1 %v2285_v1, %s2203_s11  ;;  %422 = vrot.lane.b32.xlu0 %v2285_v1, %s2204_s12  ;;  %vm355_vm0 = vcmp.lt.s32.totalorder %v2326_v12, 15  ;;  %vm398_vm1 = vcmp.lt.s32.totalorder %v2324_v11, 15  ;;  %vm325_vm8 = vcmp.ge.s32.totalorder %v2326_v12, 1  ;;  %vm399_vm12 = vmand %vm397_vm3, %vm324_vm9  ;;  %vm323_vm15 = vcmp.ge.s32.totalorder %v2324_v11, 1 }
  0x14   : > { %vm428_vm5 = vmand %vm398_vm1, %vm355_vm0 }
  0x15   : > { %vm400_vm11 = vmand %vm398_vm1, %vm325_vm8 }
  0x17   : > { %392 = vrot.lane.b32.xlu1 %v2285_v1, %s2205_s13  ;;  %390 = vrot.lane.b32.xlu0 %v2280_v0, %s2205_s13 }
  0x1b   : > { %379 = vrot.lane.b32.xlu1 %v2285_v1, %s2206_s14  ;;  %377 = vrot.lane.b32.xlu0 %v2280_v0, %s2206_s14 }
  0x1f   : > { %366 = vrot.lane.b32.xlu1 %v2285_v1, %s2207_s15  ;;  %364 = vrot.lane.b32.xlu0 %v2280_v0, %s2207_s15 }
  0x23   : > { %349 = vrot.lane.b32.xlu1 %v2285_v1, %s2209_s16  ;;  %347 = vrot.lane.b32.xlu0 %v2280_v0, %s2209_s16 }
  0x27   : > { %336 = vrot.lane.b32.xlu1 %v2285_v1, %s2210_s17  ;;  %334 = vrot.lane.b32.xlu0 %v2280_v0, %s2210_s17 }
  0x2b   : > { %317 = vrot.lane.b32.xlu1 %v2285_v1, %s2211_s18  ;;  %315 = vrot.lane.b32.xlu0 %v2280_v0, %s2211_s18 }
  0x2f   : > { %460 = vperm.xlu0 %2133, %v442_v3   ;;  %455 = vperm.xlu1 %2134, %v441_v4  }
  0x33   : > { %445 = vperm.xlu0 %2133, %v439_v6   ;;  %450 = vperm.xlu1 %2134, %v440_v7  }
  0x81   : > { %v408_v15 = vpop.permute.xlu1 %407  ;;  %v421_v16 = vpop.permute.xlu0 %420 }
  0x85   : > { %v410_v17 = vpop.permute.xlu1 %409  ;;  %v423_v18 = vpop.permute.xlu0 %422 }
  0x86   : > { %v426_v19 = vsel %vm424_vm4, %v423_v18, %v421_v16  ;;  %v425_v20 = vsel %vm424_vm4, %v421_v16, %v423_v18  ;;  %v413_v21 = vsel %vm411_vm7, %v410_v17, %v408_v15  ;;  %v412_v24 = vsel %vm411_vm7, %v408_v15, %v410_v17 }
  0x87   : > { %1869 = vmatprep.subr.msk.mxu0 %vm428_vm5, %v426_v19  ;;  %vm322_vm4 = vcmp.ge.s32.totalorder %v2329_v13, 1  ;;  %vm351_vm5 = vcmp.lt.s32.totalorder %v2321_v9, 15 }
  0x88   : > { %1870 = vmatpush1.msk.msra.mxu0 %vm427_vm6, %v425_v20  ;;  %vm357_vm6 = vmand %vm323_vm15, %vm355_vm0 }
  0x89   : > { %v393_v22 = vpop.permute.xlu1 %392  ;;  %1871 = vmatprep.subr.msk.mxu0 %vm398_vm1, %v413_v21  ;;  %v391_v23 = vpop.permute.xlu0 %390  ;;  %v794_v21 = vld [vmem:[%s3734_s2 + $0x8] sm:$0xff] }
  0x8a   : > { %1872 = vmatpush1.msk.msra.mxu0 %vm397_vm3, %v412_v24  ;;  %v396_v25 = vsel %vm394_vm10, %v393_v22, %v391_v23  ;;  %v395_v26 = vsel %vm394_vm10, %v391_v23, %v393_v22  ;;  %vm356_vm10 = vmand %vm322_vm4, %vm354_vm2  ;;  %v808_v22 = vld [vmem:[%s3737_s5 + $0x18] sm:$0xff]  ;;  %v807_v23 = vld [vmem:[%s3737_s5 + $0x10] sm:$0xff] }
  0x8b   : > { %1873 = vmatprep.subr.msk.mxu0 %vm400_vm11, %v396_v25  ;;  %vm338_vm11 = vcmp.lt.s32.totalorder %v2321_v9, 16  ;;  %v806_v24 = vld [vmem:[%s3737_s5 + $0x8] sm:$0xff]  ;;  %v805_v25 = vld [vmem:[%s3737_s5] sm:$0xff] }
  0x8c   : > { %1874 = vmatpush1.msk.msra.mxu0 %vm399_vm12, %v395_v26  ;;  %vm319_vm12 = vcmp.lt.s32.totalorder %v2321_v9, 17  ;;  %v810_v26 = vld [vmem:[%s3737_s5 + $0x28] sm:$0xff] }
  0x8d   : > { %v380_v27 = vpop.permute.xlu1 %379  ;;  %v378_v28 = vpop.permute.xlu0 %377 }
  0x8e   : > { %v383_v29 = vsel %vm381_vm13, %v380_v27, %v378_v28  ;;  %v382_v30 = vsel %vm381_vm13, %v378_v28, %v380_v27  ;;  %v809_v27 = vld [vmem:[%s3737_s5 + $0x20] sm:$0xff] }
  0x8f   : > { %1875 = vmatprep.subr.msk.mxu0 %vm355_vm0, %v383_v29 }
  0x90   : > { %1876 = vmatpush1.msk.msra.mxu0 %vm354_vm2, %v382_v30 }
  0x91   : > { %v367_v31 = vpop.permute.xlu1 %366  ;;  %498 = vmatprep.subr.mxu0 %v2285_v1  ;;  %v365_v32 = vpop.permute.xlu0 %364 }
  0x92   : > { %499 = vmatpush1.msra.mxu0 %v2280_v0  ;;  %v369_v33 = vsel %vm368_vm14, %v365_v32, %v367_v31  ;;  %v370_v34 = vsel %vm368_vm14, %v367_v31, %v365_v32 }
  0x93   : > { %1877 = vmatprep.subr.msk.mxu0 %vm325_vm8, %v369_v33 }
  0x94   : > { %1878 = vmatpush1.msk.msra.mxu0 %vm324_vm9, %v370_v34 }
  0x95   : > { %v350_v35 = vpop.permute.xlu1 %349  ;;  %v348_v36 = vpop.permute.xlu0 %347 }
  0x96   : > { %v352_v37 = vsel %vm351_vm5, %v348_v36, %v350_v35  ;;  %v353_v38 = vsel %vm351_vm5, %v350_v35, %v348_v36  ;;  %vm327_vm5 = vmand %vm323_vm15, %vm325_vm8 }
  0x97   : > { %1879 = vmatprep.subr.msk.mxu0 %vm357_vm6, %v352_v37  ;;  %vm326_vm6 = vmand %vm322_vm4, %vm324_vm9 }
  0x98   : > { %1880 = vmatpush1.msk.msra.mxu0 %vm356_vm10, %v353_v38  ;;  %vm463_vm10 = vcmask 588800  }
  0x99   : > { %v337_v39 = vpop.permute.xlu1 %336  ;;  %v335_v40 = vpop.permute.xlu0 %334 }
  0x9a   : > { %v339_v41 = vsel %vm338_vm11, %v335_v40, %v337_v39  ;;  %v340_v42 = vsel %vm338_vm11, %v337_v39, %v335_v40 }
  0x9b   : > { %1881 = vmatprep.subr.msk.mxu0 %vm323_vm15, %v339_v41 }
  0x9c   : > { %1882 = vmatpush1.msk.msra.mxu0 %vm322_vm4, %v340_v42 }
  0x9d   : > { %v318_v43 = vpop.permute.xlu1 %317  ;;  %v316_v44 = vpop.permute.xlu0 %315 }
  0x9e   : > { %v320_v45 = vsel %vm319_vm12, %v316_v44, %v318_v43  ;;  %v321_v46 = vsel %vm319_vm12, %v318_v43, %v316_v44  ;;  %vm841_vm12 = vcmask 785408  }
  0x9f   : > { %1883 = vmatprep.subr.msk.mxu0 %vm327_vm5, %v320_v45  ;;  %1937 = vmatprep.mubr.msk.f32.mxu1 %vm841_vm12, %v794_v21  ;;  %vm638_vm5 = vcmp.ge.s32.totalorder %v2324_v11, 2 }
  0xa0   : > { %1884 = vmatpush1.msk.msra.mxu0 %vm326_vm6, %v321_v46  ;;  %vm628_vm6 = vcmp.lt.s32.totalorder %v2321_v9, 32 }
  0xa1   : > { %1885 = vmatmul.mubr.msk.f32.vlgmr.msra.gmra.mxu0 %vm463_vm10, %v435_v47 }
  0xa2   : > { %546 = vmatprep.mubr.f32.mxu0 %v2208_v2 }
  0xa5   : > { %1886 = vmatmul.mubr.msk.f32.gmra.mxu0 %vm463_vm10, %v436_v48 }
  0xa6   : > { %552 = vmatprep.mubr.f32.mxu0 %v2208_v2 }
  0xa9   : > { %1887 = vmatmul.mubr.msk.f32.gmra.mxu0 %vm463_vm10, %v437_v49 }
  0xaa   : > { %558 = vmatprep.mubr.f32.mxu0 %v2208_v2  ;;  %v461_v51 = vpop.permute.xlu0 %460  ;;  %v456_v56 = vpop.permute.xlu1 %455 }
  0xad   : > { %1888 = vmatmul.mubr.msk.f32.gmra.mxu0 %vm463_vm10, %v438_v50  ;;  %vm637_vm10 = vcmp.ge.s32.totalorder %v2329_v13, 2 }
  0xae   : > { %v446_v52 = vpop.permute.xlu0 %445  ;;  %v451_v63 = vpop.permute.xlu1 %450 }
 0x161   : > { %v542_v53 = vpop.f32.mrf.mxu0 }
 0x162   : > { %v543_v54 = vadd.f32 %v542_v53, %v446_v52 }
 0x163   : > { %v544_v55 = vpop.f32.mrf.mxu0 }
 0x164   : > { %v2431_v57 = vmax.f32 %v543_v54, 0.0  ;;  %v545_v58 = vadd.f32 %v544_v55, %v446_v52 }
 0x165   : > { %v548_v59 = vpop.f32.mrf.mxu0 }
 0x166   : > { %v2433_v60 = vmax.f32 %v545_v58, 0.0  ;;  %651 = vrot.lane.b32.xlu1 %v2431_v57, %s2210_s17  ;;  %v549_v1 = vadd.f32 %v548_v59, %v451_v63 }
 0x167   : > { %v550_v61 = vpop.f32.mrf.mxu0 }
 0x168   : > { %659 = vrot.lane.b32.xlu0 %v2433_v60, %s2210_s17  ;;  %v551_v4 = vadd.f32 %v550_v61, %v451_v63  ;;  %v567_v7 = vmax.f32 %v549_v1, 0.0 }
 0x169   : > { %v554_v62 = vpop.f32.mrf.mxu0 }
 0x16a   : > { %612 = vrot.lane.b32.xlu1 %v2431_v57, %s2213_s19  ;;  %v555_v15 = vadd.f32 %v554_v62, %v456_v56  ;;  %v568_v16 = vmax.f32 %v551_v4, 0.0 }
 0x16b   : > { %v556_v0 = vpop.f32.mrf.mxu0 }
 0x16c   : > { %620 = vrot.lane.b32.xlu0 %v2433_v60, %s2213_s19  ;;  %v557_v8 = vadd.f32 %v556_v0, %v456_v56  ;;  %v569_v20 = vmax.f32 %v555_v15, 0.0 }
 0x16d   : > { %v560_v3 = vpop.f32.mrf.mxu0 }
 0x16e   : > { %573 = vrot.lane.b32.xlu1 %v2431_v57, %s2214_s20  ;;  %v561_v5 = vadd.f32 %v560_v3, %v461_v51  ;;  %v570_v19 = vmax.f32 %v557_v8, 0.0 }
 0x16f   : > { %v562_v6 = vpop.f32.mrf.mxu0 }
 0x170   : > { %v563_v10 = vadd.f32 %v562_v6, %v461_v51  ;;  %581 = vrot.lane.b32.xlu0 %v2433_v60, %s2214_s20  ;;  %v571_v18 = vmax.f32 %v561_v5, 0.0 }
 0x172   : > { %v572_v17 = vmax.f32 %v563_v10, 0.0  ;;  %653 = vrot.lane.b32.xlu1 %v567_v7, %s2210_s17 }
 0x174   : > { %860 = vmatprep.subr.mxu1 %v572_v17  ;;  %661 = vrot.lane.b32.xlu0 %v568_v16, %s2210_s17 }
 0x175   : > { %861 = vmatpush1.msra.mxu1 %v571_v18 }
 0x176   : > { %862 = vmatprep.subr.mxu1 %v570_v19  ;;  %614 = vrot.lane.b32.xlu1 %v567_v7, %s2213_s19 }
 0x177   : > { %863 = vmatpush1.msra.mxu1 %v569_v20 }
 0x178   : > { %864 = vmatprep.subr.mxu1 %v568_v16  ;;  %622 = vrot.lane.b32.xlu0 %v568_v16, %s2213_s19 }
 0x179   : > { %865 = vmatpush1.msra.mxu1 %v567_v7 }
 0x17a   : > { %866 = vmatprep.subr.mxu1 %v2433_v60  ;;  %575 = vrot.lane.b32.xlu1 %v567_v7, %s2214_s20 }
 0x17b   : > { %867 = vmatpush1.msra.mxu1 %v2431_v57 }
 0x17c   : > { %583 = vrot.lane.b32.xlu0 %v568_v16, %s2214_s20 }
 0x17e   : > { %756 = vrot.lane.b32.xlu1 %v567_v7, %s2215_s21 }
 0x180   : > { %764 = vrot.lane.b32.xlu0 %v568_v16, %s2215_s21 }
 0x182   : > { %655 = vrot.lane.b32.xlu1 %v569_v20, %s2210_s17 }
 0x184   : > { %663 = vrot.lane.b32.xlu0 %v570_v19, %s2210_s17 }
 0x186   : > { %616 = vrot.lane.b32.xlu1 %v569_v20, %s2213_s19 }
 0x188   : > { %624 = vrot.lane.b32.xlu0 %v570_v19, %s2213_s19 }
 0x18a   : > { %577 = vrot.lane.b32.xlu1 %v569_v20, %s2214_s20 }
 0x18c   : > { %585 = vrot.lane.b32.xlu0 %v570_v19, %s2214_s20 }
 0x18e   : > { %758 = vrot.lane.b32.xlu1 %v569_v20, %s2215_s21 }
 0x190   : > { %766 = vrot.lane.b32.xlu0 %v570_v19, %s2215_s21 }
 0x192   : > { %657 = vrot.lane.b32.xlu1 %v571_v18, %s2210_s17 }
 0x194   : > { %665 = vrot.lane.b32.xlu0 %v572_v17, %s2210_s17 }
 0x196   : > { %754 = vrot.lane.b32.xlu1 %v2431_v57, %s2215_s21 }
 0x198   : > { %762 = vrot.lane.b32.xlu0 %v2433_v60, %s2215_s21 }
 0x19a   : > { %618 = vrot.lane.b32.xlu1 %v571_v18, %s2213_s19 }
 0x19c   : > { %626 = vrot.lane.b32.xlu0 %v572_v17, %s2213_s19 }
 0x19e   : > { %579 = vrot.lane.b32.xlu1 %v571_v18, %s2214_s20 }
 0x1a0   : > { %727 = vrot.lane.b32.xlu0 %v570_v19, %s2216_s22 }
 0x1a2   : > { %760 = vrot.lane.b32.xlu1 %v571_v18, %s2215_s21 }
 0x1a4   : > { %587 = vrot.lane.b32.xlu0 %v572_v17, %s2214_s20 }
 0x1a6   : > { %721 = vrot.lane.b32.xlu1 %v571_v18, %s2216_s22 }
 0x1a8   : > { %725 = vrot.lane.b32.xlu0 %v568_v16, %s2216_s22 }
 0x1aa   : > { %719 = vrot.lane.b32.xlu1 %v569_v20, %s2216_s22 }
 0x1ac   : > { %768 = vrot.lane.b32.xlu0 %v572_v17, %s2215_s21 }
 0x1ae   : > { %717 = vrot.lane.b32.xlu1 %v567_v7, %s2216_s22 }
 0x1b0   : > { %723 = vrot.lane.b32.xlu0 %v2433_v60, %s2216_s22 }
 0x1b2   : > { %715 = vrot.lane.b32.xlu1 %v2431_v57, %s2216_s22 }
 0x1b4   : > { %729 = vrot.lane.b32.xlu0 %v572_v17, %s2216_s22 }
 0x1b6   : > { %689 = vrot.lane.b32.xlu1 %v571_v18, %s2203_s11 }
 0x1b8   : > { %695 = vrot.lane.b32.xlu0 %v570_v19, %s2203_s11 }
 0x1ba   : > { %687 = vrot.lane.b32.xlu1 %v569_v20, %s2203_s11 }
 0x1bc   : > { %697 = vrot.lane.b32.xlu0 %v572_v17, %s2203_s11 }
 0x1be   : > { %685 = vrot.lane.b32.xlu1 %v567_v7, %s2203_s11 }
 0x1c0   : > { %693 = vrot.lane.b32.xlu0 %v568_v16, %s2203_s11 }
 0x1c2   : > { %683 = vrot.lane.b32.xlu1 %v2431_v57, %s2203_s11 }
 0x1c4   : > { %691 = vrot.lane.b32.xlu0 %v2433_v60, %s2203_s11 }
 0x1c6   : > { %828 = vperm.xlu1 %2134, %v808_v22  }
 0x1c8   : > { %823 = vperm.xlu0 %2133, %v807_v23  }
 0x1ca   : > { %818 = vperm.xlu1 %2134, %v806_v24  }
 0x1cc   : > { %813 = vperm.xlu0 %2133, %v805_v25  }
 0x1ce   : > { %838 = vperm.xlu1 %2134, %v810_v26  }
 0x1d0   : > { %833 = vperm.xlu0 %2133, %v809_v27  }
 0x1d8   : > { %v652_v28 = vpop.permute.xlu1 %651 }
 0x1da   : > { %v660_v29 = vpop.permute.xlu0 %659 }
 0x1db   : > { %v667_v61 = vsel %vm338_vm11, %v652_v28, %v660_v29  ;;  %v671_v63 = vsel %vm338_vm11, %v660_v29, %v652_v28 }
 0x1dc   : > { %v2503_v30 = vpop.permute.xlu1 %612 }
 0x1de   : > { %v2505_v31 = vpop.permute.xlu0 %620 }
 0x1df   : > { %v629_v15 = vsel %vm628_vm6, %v2503_v30, %v2505_v31  ;;  %v633_v17 = vsel %vm628_vm6, %v2505_v31, %v2503_v30 }
 0x1e0   : > { %v2507_v32 = vpop.permute.xlu1 %573 }
 0x1e2   : > { %v2509_v33 = vpop.permute.xlu0 %581 }
 0x1e4   : > { %v654_v34 = vpop.permute.xlu1 %653 }
 0x1e6   : > { %v662_v35 = vpop.permute.xlu0 %661 }
 0x1e7   : > { %v668_v58 = vsel %vm338_vm11, %v654_v34, %v662_v35  ;;  %v672_v60 = vsel %vm338_vm11, %v662_v35, %v654_v34 }
 0x1e8   : > { %v615_v36 = vpop.permute.xlu1 %614 }
 0x1ea   : > { %v623_v37 = vpop.permute.xlu0 %622 }
 0x1eb   : > { %v630_v7 = vsel %vm628_vm6, %v615_v36, %v623_v37  ;;  %v634_v10 = vsel %vm628_vm6, %v623_v37, %v615_v36 }
 0x1ec   : > { %v2511_v38 = vpop.permute.xlu1 %575 }
 0x1ee   : > { %v2513_v39 = vpop.permute.xlu0 %583 }
 0x1f0   : > { %v2515_v40 = vpop.permute.xlu1 %756 }
 0x1f2   : > { %v2517_v41 = vpop.permute.xlu0 %764 }
 0x1f4   : > { %v656_v42 = vpop.permute.xlu1 %655 }
 0x1f6   : > { %v664_v43 = vpop.permute.xlu0 %663 }
 0x1f7   : > { %v669_v55 = vsel %vm338_vm11, %v656_v42, %v664_v43  ;;  %v673_v57 = vsel %vm338_vm11, %v664_v43, %v656_v42 }
 0x1f8   : > { %v617_v44 = vpop.permute.xlu1 %616 }
 0x1fa   : > { %v625_v45 = vpop.permute.xlu0 %624 }
 0x1fb   : > { %v631_v4 = vsel %vm628_vm6, %v617_v44, %v625_v45  ;;  %v635_v6 = vsel %vm628_vm6, %v625_v45, %v617_v44 }
 0x1fc   : > { %v578_v46 = vpop.permute.xlu1 %577 }
 0x1fe   : > { %v586_v47 = vpop.permute.xlu0 %585 }
 0x200   : > { %v2519_v48 = vpop.permute.xlu1 %758 }
 0x202   : > { %v2521_v49 = vpop.permute.xlu0 %766 }
 0x204   : > { %v658_v50 = vpop.permute.xlu1 %657 }
 0x206   : > { %v666_v51 = vpop.permute.xlu0 %665 }
 0x207   : > { %v670_v52 = vsel %vm338_vm11, %v658_v50, %v666_v51  ;;  %v674_v53 = vsel %vm338_vm11, %v666_v51, %v658_v50  ;;  %vm598_vm11 = vcmp.ge.s32.totalorder %v2329_v13, 3 }
 0x208   : > { %v2527_v54 = vpop.permute.xlu1 %754  ;;  %1889 = vmatprep.subr.msk.mxu1 %vm323_vm15, %v670_v52 }
 0x209   : > { %1890 = vmatpush1.msk.msra.mxu1 %vm322_vm4, %v674_v53 }
 0x20a   : > { %v2535_v56 = vpop.permute.xlu0 %762  ;;  %1891 = vmatprep.subr.msk.mxu1 %vm323_vm15, %v669_v55 }
 0x20b   : > { %1892 = vmatpush1.msk.msra.mxu1 %vm322_vm4, %v673_v57 }
 0x20c   : > { %v619_v59 = vpop.permute.xlu1 %618  ;;  %1893 = vmatprep.subr.msk.mxu1 %vm323_vm15, %v668_v58 }
 0x20d   : > { %1894 = vmatpush1.msk.msra.mxu1 %vm322_vm4, %v672_v60 }
 0x20e   : > { %v627_v62 = vpop.permute.xlu0 %626  ;;  %1895 = vmatprep.subr.msk.mxu1 %vm323_vm15, %v667_v61  ;;  %vm599_vm15 = vcmp.ge.s32.totalorder %v2324_v11, 3 }
 0x20f   : > { %1896 = vmatpush1.msk.msra.mxu1 %vm322_vm4, %v671_v63  ;;  %v632_v0 = vsel %vm628_vm6, %v619_v59, %v627_v62  ;;  %v636_v1 = vsel %vm628_vm6, %v627_v62, %v619_v59  ;;  %vm589_vm4 = vcmp.lt.s32.totalorder %v2321_v9, 48  ;;  %vm770_vm6 = vcmp.lt.s32.totalorder %v2321_v9, 80 }
 0x210   : > { %v580_v3 = vpop.permute.xlu1 %579  ;;  %1897 = vmatprep.subr.msk.mxu1 %vm638_vm5, %v632_v0  ;;  %v592_v21 = vsel %vm589_vm4, %v578_v46, %v586_v47  ;;  %v596_v23 = vsel %vm589_vm4, %v586_v47, %v578_v46  ;;  %v591_v24 = vsel %vm589_vm4, %v2511_v38, %v2513_v39  ;;  %v595_v26 = vsel %vm589_vm4, %v2513_v39, %v2511_v38 }
 0x211   : > { %1898 = vmatpush1.msk.msra.mxu1 %vm637_vm10, %v636_v1  ;;  %v590_v27 = vsel %vm589_vm4, %v2507_v32, %v2509_v33  ;;  %v594_v29 = vsel %vm589_vm4, %v2509_v33, %v2507_v32  ;;  %v777_v32 = vsel %vm770_vm6, %v2521_v49, %v2519_v48  ;;  %v773_v35 = vsel %vm770_vm6, %v2519_v48, %v2521_v49 }
 0x212   : > { %v2572_v5 = vpop.permute.xlu0 %727  ;;  %1899 = vmatprep.subr.msk.mxu1 %vm638_vm5, %v631_v4  ;;  %v776_v36 = vsel %vm770_vm6, %v2517_v41, %v2515_v40  ;;  %v772_v38 = vsel %vm770_vm6, %v2515_v40, %v2517_v41  ;;  %v775_v39 = vsel %vm770_vm6, %v2535_v56, %v2527_v54  ;;  %v771_v43 = vsel %vm770_vm6, %v2527_v54, %v2535_v56  ;;  %v796_v4 = vld [vmem:[%s3734_s2 + $0x18] sm:$0xff] }
 0x213   : > { %1900 = vmatpush1.msk.msra.mxu1 %vm637_vm10, %v635_v6  ;;  %v798_v6 = vld [vmem:[%s3734_s2 + $0x28] sm:$0xff] }
 0x214   : > { %v761_v8 = vpop.permute.xlu1 %760  ;;  %1901 = vmatprep.subr.msk.mxu1 %vm638_vm5, %v630_v7  ;;  %v799_v7 = vld [vmem:[%s3734_s2 + $0x30] sm:$0xff] }
 0x215   : > { %1902 = vmatpush1.msk.msra.mxu1 %vm637_vm10, %v634_v10  ;;  %v801_v10 = vld [vmem:[%s3734_s2 + $0x40] sm:$0xff] }
 0x216   : > { %v588_v16 = vpop.permute.xlu0 %587  ;;  %1903 = vmatprep.subr.msk.mxu1 %vm638_vm5, %v629_v15  ;;  %vm780_vm5 = vcmp.lt.s32.totalorder %v2324_v11, 13  ;;  %v804_v15 = vld [vmem:[%s3734_s2 + $0x58] sm:$0xff] }
 0x217   : > { %1904 = vmatpush1.msk.msra.mxu1 %vm637_vm10, %v633_v17  ;;  %v593_v18 = vsel %vm589_vm4, %v580_v3, %v588_v16  ;;  %v597_v19 = vsel %vm589_vm4, %v588_v16, %v580_v3  ;;  %vm779_vm10 = vcmp.lt.s32.totalorder %v2329_v13, 13  ;;  %vm731_vm4 = vcmp.lt.s32.totalorder %v2321_v9, 96  ;;  %v793_v3 = vld [vmem:[%s3734_s2] sm:$0xff]  ;;  %v803_v16 = vld [vmem:[%s3734_s2 + $0x50] sm:$0xff] }
 0x218   : > { %v722_v20 = vpop.permute.xlu1 %721  ;;  %1905 = vmatprep.subr.msk.mxu1 %vm599_vm15, %v593_v18 }
 0x219   : > { %1906 = vmatpush1.msk.msra.mxu1 %vm598_vm11, %v597_v19 }
 0x21a   : > { %v726_v22 = vpop.permute.xlu0 %725  ;;  %1907 = vmatprep.subr.msk.mxu1 %vm599_vm15, %v592_v21 }
 0x21b   : > { %1908 = vmatpush1.msk.msra.mxu1 %vm598_vm11, %v596_v23 }
 0x21c   : > { %v720_v25 = vpop.permute.xlu1 %719  ;;  %1909 = vmatprep.subr.msk.mxu1 %vm599_vm15, %v591_v24 }
 0x21d   : > { %1910 = vmatpush1.msk.msra.mxu1 %vm598_vm11, %v595_v26  ;;  %v738_v45 = vsel %vm731_vm4, %v2572_v5, %v720_v25  ;;  %v734_v47 = vsel %vm731_vm4, %v720_v25, %v2572_v5  ;;  %v795_v5 = vld [vmem:[%s3734_s2 + $0x10] sm:$0xff] }
 0x21e   : > { %v769_v28 = vpop.permute.xlu0 %768  ;;  %1911 = vmatprep.subr.msk.mxu1 %vm599_vm15, %v590_v27  ;;  %vm741_vm15 = vcmp.lt.s32.totalorder %v2324_v11, 14  ;;  %v797_v11 = vld [vmem:[%s3734_s2 + $0x20] sm:$0xff] }
 0x21f   : > { %1912 = vmatpush1.msk.msra.mxu1 %vm598_vm11, %v594_v29  ;;  %v778_v30 = vsel %vm770_vm6, %v769_v28, %v761_v8  ;;  %v774_v31 = vsel %vm770_vm6, %v761_v8, %v769_v28  ;;  %vm740_vm11 = vcmp.lt.s32.totalorder %v2329_v13, 14  ;;  %v800_v13 = vld [vmem:[%s3734_s2 + $0x38] sm:$0xff]  ;;  %v802_v8 = vld [vmem:[%s3734_s2 + $0x48] sm:$0xff]  ;;  %vm1065_vm6 = vcmp.ge.s32.totalorder %v2332_v14, 2 }
 0x220   : > { %v718_v34 = vpop.permute.xlu1 %717  ;;  %1913 = vmatprep.subr.msk.mxu1 %vm780_vm5, %v778_v30 }
 0x221   : > { %1914 = vmatpush2.msk.msra.mxu1 %vm779_vm10, %v774_v31  ;;  %v737_v48 = vsel %vm731_vm4, %v726_v22, %v718_v34  ;;  %v733_v50 = vsel %vm731_vm4, %v718_v34, %v726_v22 }
 0x222   : > { %v724_v33 = vpop.permute.xlu0 %723  ;;  %1915 = vmatprep.subr.msk.mxu1 %vm780_vm5, %v777_v32 }
 0x223   : > { %1916 = vmatpush2.msk.msra.mxu1 %vm779_vm10, %v773_v35 }
 0x224   : > { %v716_v37 = vpop.permute.xlu1 %715  ;;  %1917 = vmatprep.subr.msk.mxu1 %vm780_vm5, %v776_v36 }
 0x225   : > { %1918 = vmatpush2.msk.msra.mxu1 %vm779_vm10, %v772_v38  ;;  %v736_v51 = vsel %vm731_vm4, %v724_v33, %v716_v37  ;;  %v732_v53 = vsel %vm731_vm4, %v716_v37, %v724_v33 }
 0x226   : > { %v730_v42 = vpop.permute.xlu0 %729  ;;  %1919 = vmatprep.subr.msk.mxu1 %vm780_vm5, %v775_v39  ;;  %vm1066_vm5 = vcmp.ge.s32.totalorder %v2326_v12, 2 }
 0x227   : > { %1920 = vmatpush2.msk.msra.mxu1 %vm779_vm10, %v771_v43  ;;  %v739_v40 = vsel %vm731_vm4, %v730_v42, %v722_v20  ;;  %v735_v41 = vsel %vm731_vm4, %v722_v20, %v730_v42  ;;  %vm1011_vm10 = vcmp.ge.s32.totalorder %v2326_v12, 3  ;;  %vm1217_vm4 = vcmp.lt.s32.totalorder %v2326_v12, 14 }
 0x228   : > { %v690_v44 = vpop.permute.xlu1 %689  ;;  %1921 = vmatprep.subr.msk.mxu1 %vm741_vm15, %v739_v40 }
 0x229   : > { %1922 = vmatpush2.msk.msra.mxu1 %vm740_vm11, %v735_v41 }
 0x22a   : > { %v696_v46 = vpop.permute.xlu0 %695  ;;  %1923 = vmatprep.subr.msk.mxu1 %vm741_vm15, %v738_v45 }
 0x22b   : > { %1924 = vmatpush2.msk.msra.mxu1 %vm740_vm11, %v734_v47 }
 0x22c   : > { %v688_v49 = vpop.permute.xlu1 %687  ;;  %1925 = vmatprep.subr.msk.mxu1 %vm741_vm15, %v737_v48 }
 0x22d   : > { %1926 = vmatpush2.msk.msra.mxu1 %vm740_vm11, %v733_v50  ;;  %v705_v57 = vsel %vm411_vm7, %v696_v46, %v688_v49  ;;  %v701_v59 = vsel %vm411_vm7, %v688_v49, %v696_v46 }
 0x22e   : > { %v698_v52 = vpop.permute.xlu0 %697  ;;  %1927 = vmatprep.subr.msk.mxu1 %vm741_vm15, %v736_v51  ;;  %vm1010_vm15 = vcmp.ge.s32.totalorder %v2332_v14, 3 }
 0x22f   : > { %1928 = vmatpush2.msk.msra.mxu1 %vm740_vm11, %v732_v53  ;;  %v706_v54 = vsel %vm411_vm7, %v698_v52, %v690_v44  ;;  %v702_v55 = vsel %vm411_vm7, %v690_v44, %v698_v52  ;;  %vm1216_vm11 = vcmp.lt.s32.totalorder %v2332_v14, 14 }
 0x230   : > { %v686_v56 = vpop.permute.xlu1 %685  ;;  %1929 = vmatprep.subr.msk.mxu1 %vm398_vm1, %v706_v54 }
 0x231   : > { %1930 = vmatpush2.msk.msra.mxu1 %vm397_vm3, %v702_v55 }
 0x232   : > { %v694_v58 = vpop.permute.xlu0 %693  ;;  %1931 = vmatprep.subr.msk.mxu1 %vm398_vm1, %v705_v57 }
 0x233   : > { %1932 = vmatpush2.msk.msra.mxu1 %vm397_vm3, %v701_v59  ;;  %v704_v60 = vsel %vm411_vm7, %v694_v58, %v686_v56  ;;  %v700_v61 = vsel %vm411_vm7, %v686_v56, %v694_v58 }
 0x234   : > { %1933 = vmatprep.subr.msk.mxu1 %vm398_vm1, %v704_v60  ;;  %v684_v62 = vpop.permute.xlu1 %683 }
 0x235   : > { %1934 = vmatpush2.msk.msra.mxu1 %vm397_vm3, %v700_v61 }
 0x236   : > { %v692_v63 = vpop.permute.xlu0 %691 }
 0x237   : > { %v699_v0 = vsel %vm411_vm7, %v684_v62, %v692_v63  ;;  %v703_v1 = vsel %vm411_vm7, %v692_v63, %v684_v62 }
 0x238   : > { %1935 = vmatprep.subr.msk.mxu1 %vm398_vm1, %v703_v1  ;;  %vm1052_vm1 = vcmp.lt.s32.totalorder %v2321_v9, 2 }
 0x239   : > { %1936 = vmatpush2.msk.msra.mxu1 %vm397_vm3, %v699_v0  ;;  %vm997_vm3 = vcmp.lt.s32.totalorder %v2321_v9, 3 }
 0x23a   : > { %925 = vmatmul.mubr.f32.vlgmr.msra.gmra.mxu1 %v793_v3 }
 0x23b   : > { %1938 = vmatprep.mubr.msk.f32.mxu1 %vm841_vm12, %v796_v4 }
 0x23e   : > { %931 = vmatmul.mubr.f32.gmra.mxu1 %v795_v5 }
 0x23f   : > { %1939 = vmatprep.mubr.msk.f32.mxu1 %vm841_vm12, %v798_v6 }
 0x241   : > { %v829_v25 = vpop.permute.xlu1 %828 }
 0x242   : > { %937 = vmatmul.mubr.f32.gmra.mxu1 %v797_v11 }
 0x243   : > { %1940 = vmatprep.mubr.msk.f32.mxu1 %vm841_vm12, %v800_v13  ;;  %v824_v17 = vpop.permute.xlu0 %823  ;;  %v1290_v13 = vld [vmem:[%s3735_s3 + $0x8] sm:$0xff] }
 0x244   : > { %1426 = vmatprep.mubr.f32.mxu0 %v1290_v13 }
 0x245   : > { %v819_v27 = vpop.permute.xlu1 %818 }
 0x246   : > { %943 = vmatmul.mubr.f32.gmra.mxu1 %v799_v7 }
 0x247   : > { %1941 = vmatprep.mubr.msk.f32.mxu1 %vm841_vm12, %v802_v8  ;;  %v814_v18 = vpop.permute.xlu0 %813 }
 0x249   : > { %v839_v53 = vpop.permute.xlu1 %838 }
 0x24a   : > { %949 = vmatmul.mubr.f32.gmra.mxu1 %v801_v10 }
 0x24b   : > { %1942 = vmatprep.mubr.msk.f32.mxu1 %vm841_vm12, %v804_v15  ;;  %v834_v46 = vpop.permute.xlu0 %833  ;;  %vm1203_vm12 = vcmp.lt.s32.totalorder %v2321_v9, 126 }
 0x24e   : > { %955 = vmatmul.mubr.f32.gmra.mxu1 %v803_v16 }
 0x24f   : > { %1527 = vmatprep.mubr.f32.mxu1 %v2208_v2 }
 0x2fa   : > { %v926_v19 = vpop.f32.mrf.mxu1 }
 0x2fb   : > { %v927_v20 = vadd.f32 %v926_v19, %v814_v18 }
 0x2fc   : > { %v928_v21 = vpop.f32.mrf.mxu1 }
 0x2fd   : > { %v2798_v22 = vmax.f32 %v927_v20, 0.0  ;;  %v929_v23 = vadd.f32 %v928_v21, %v814_v18 }
 0x2fe   : > { %v932_v26 = vpop.f32.mrf.mxu1 }
 0x2ff   : > { %v2800_v24 = vmax.f32 %v929_v23, 0.0  ;;  %1083 = vrot.lane.b32.xlu1 %v2798_v22, %s2207_s15  ;;  %v933_v29 = vadd.f32 %v932_v26, %v819_v27  ;;  %v1309_v26 = vld [vmem:[%s3738_s6 + $0x10] sm:$0xff] }
 0x300   : > { %v934_v28 = vpop.f32.mrf.mxu1 }
 0x301   : > { %1095 = vrot.lane.b32.xlu0 %v2800_v24, %s2207_s15  ;;  %v935_v30 = vadd.f32 %v934_v28, %v819_v27  ;;  %v2820_v31 = vmax.f32 %v933_v29, 0.0  ;;  %v1310_v28 = vld [vmem:[%s3738_s6 + $0x18] sm:$0xff] }
 0x302   : > { %v938_v32 = vpop.f32.mrf.mxu1 }
 0x303   : > { %1028 = vrot.lane.b32.xlu1 %v2798_v22, %s2217_s24  ;;  %v2824_v34 = vmax.f32 %v935_v30, 0.0  ;;  %v939_v35 = vadd.f32 %v938_v32, %v824_v17 }
 0x304   : > { %v940_v33 = vpop.f32.mrf.mxu1 }
 0x305   : > { %1040 = vrot.lane.b32.xlu0 %v2800_v24, %s2217_s24  ;;  %v941_v36 = vadd.f32 %v940_v33, %v824_v17  ;;  %v2844_v37 = vmax.f32 %v939_v35, 0.0  ;;  %v1307_v33 = vld [vmem:[%s3738_s6] sm:$0xff] }
 0x306   : > { %v944_v39 = vpop.f32.mrf.mxu1 }
 0x307   : > { %973 = vrot.lane.b32.xlu1 %v2798_v22, %s2218_s25  ;;  %v2848_v38 = vmax.f32 %v941_v36, 0.0  ;;  %v945_v43 = vadd.f32 %v944_v39, %v829_v25  ;;  %v1311_v36 = vld [vmem:[%s3738_s6 + $0x20] sm:$0xff] }
 0x308   : > { %v946_v42 = vpop.f32.mrf.mxu1 }
 0x309   : > { %985 = vrot.lane.b32.xlu0 %v2800_v24, %s2218_s25  ;;  %v947_v40 = vadd.f32 %v946_v42, %v829_v25  ;;  %v2864_v41 = vmax.f32 %v945_v43, 0.0 }
 0x30a   : > { %v950_v45 = vpop.f32.mrf.mxu1 }
 0x30b   : > { %1179 = vrot.lane.b32.xlu1 %v2798_v22, %s2219_s26  ;;  %v2868_v44 = vmax.f32 %v947_v40, 0.0  ;;  %v951_v48 = vadd.f32 %v950_v45, %v834_v46  ;;  %v1308_v40 = vld [vmem:[%s3738_s6 + $0x8] sm:$0xff] }
 0x30c   : > { %v952_v47 = vpop.f32.mrf.mxu1 }
 0x30d   : > { %1191 = vrot.lane.b32.xlu0 %v2800_v24, %s2219_s26  ;;  %v953_v49 = vadd.f32 %v952_v47, %v834_v46  ;;  %v2884_v50 = vmax.f32 %v951_v48, 0.0  ;;  %v1312_v46 = vld [vmem:[%s3738_s6 + $0x28] sm:$0xff] }
 0x30e   : > { %v956_v52 = vpop.f32.mrf.mxu1 }
 0x30f   : > { %1131 = vrot.lane.b32.xlu1 %v2798_v22, %s2206_s14  ;;  %v2888_v51 = vmax.f32 %v953_v49, 0.0  ;;  %v957_v55 = vadd.f32 %v956_v52, %v839_v53 }
 0x310   : > { %v958_v54 = vpop.f32.mrf.mxu1 }
 0x311   : > { %1143 = vrot.lane.b32.xlu0 %v2800_v24, %s2206_s14  ;;  %v959_v56 = vadd.f32 %v958_v54, %v839_v53  ;;  %v2900_v57 = vmax.f32 %v957_v55, 0.0 }
 0x313   : > { %1085 = vrot.lane.b32.xlu1 %v2820_v31, %s2207_s15  ;;  %v2904_v58 = vmax.f32 %v959_v56, 0.0 }
 0x315   : > { %1097 = vrot.lane.b32.xlu0 %v2824_v34, %s2207_s15 }
 0x317   : > { %1030 = vrot.lane.b32.xlu1 %v2820_v31, %s2217_s24 }
 0x319   : > { %1042 = vrot.lane.b32.xlu0 %v2824_v34, %s2217_s24 }
 0x31b   : > { %975 = vrot.lane.b32.xlu1 %v2820_v31, %s2218_s25 }
 0x31d   : > { %987 = vrot.lane.b32.xlu0 %v2824_v34, %s2218_s25 }
 0x31f   : > { %1181 = vrot.lane.b32.xlu1 %v2820_v31, %s2219_s26 }
 0x321   : > { %1193 = vrot.lane.b32.xlu0 %v2824_v34, %s2219_s26 }
 0x323   : > { %1133 = vrot.lane.b32.xlu1 %v2820_v31, %s2206_s14 }
 0x325   : > { %1145 = vrot.lane.b32.xlu0 %v2824_v34, %s2206_s14 }
 0x327   : > { %1087 = vrot.lane.b32.xlu1 %v2844_v37, %s2207_s15 }
 0x329   : > { %1099 = vrot.lane.b32.xlu0 %v2848_v38, %s2207_s15 }
 0x32b   : > { %1032 = vrot.lane.b32.xlu1 %v2844_v37, %s2217_s24 }
 0x32d   : > { %1044 = vrot.lane.b32.xlu0 %v2848_v38, %s2217_s24 }
 0x32f   : > { %977 = vrot.lane.b32.xlu1 %v2844_v37, %s2218_s25 }
 0x331   : > { %989 = vrot.lane.b32.xlu0 %v2848_v38, %s2218_s25 }
 0x333   : > { %1135 = vrot.lane.b32.xlu1 %v2844_v37, %s2206_s14 }
 0x335   : > { %1147 = vrot.lane.b32.xlu0 %v2848_v38, %s2206_s14 }
 0x337   : > { %1089 = vrot.lane.b32.xlu1 %v2864_v41, %s2207_s15 }
 0x339   : > { %1101 = vrot.lane.b32.xlu0 %v2868_v44, %s2207_s15 }
 0x33b   : > { %1034 = vrot.lane.b32.xlu1 %v2864_v41, %s2217_s24 }
 0x33d   : > { %1046 = vrot.lane.b32.xlu0 %v2868_v44, %s2217_s24 }
 0x33f   : > { %979 = vrot.lane.b32.xlu1 %v2864_v41, %s2218_s25 }
 0x341   : > { %991 = vrot.lane.b32.xlu0 %v2868_v44, %s2218_s25 }
 0x343   : > { %1137 = vrot.lane.b32.xlu1 %v2864_v41, %s2206_s14 }
 0x345   : > { %1149 = vrot.lane.b32.xlu0 %v2868_v44, %s2206_s14 }
 0x347   : > { %1036 = vrot.lane.b32.xlu1 %v2884_v50, %s2217_s24 }
 0x349   : > { %1048 = vrot.lane.b32.xlu0 %v2888_v51, %s2217_s24 }
 0x34b   : > { %981 = vrot.lane.b32.xlu1 %v2884_v50, %s2218_s25 }
 0x34d   : > { %993 = vrot.lane.b32.xlu0 %v2888_v51, %s2218_s25 }
 0x34f   : > { %1139 = vrot.lane.b32.xlu1 %v2884_v50, %s2206_s14 }
 0x351   : > { %1151 = vrot.lane.b32.xlu0 %v2888_v51, %s2206_s14 }
 0x353   : > { %1038 = vrot.lane.b32.xlu1 %v2900_v57, %s2217_s24 }
 0x355   : > { %1050 = vrot.lane.b32.xlu0 %v2904_v58, %s2217_s24 }
 0x357   : > { %1242 = vrot.lane.b32.xlu1 %v2884_v50, %s2220_s29 }
 0x359   : > { %1254 = vrot.lane.b32.xlu0 %v2888_v51, %s2220_s29 }
 0x35b   : > { %983 = vrot.lane.b32.xlu1 %v2900_v57, %s2218_s25 }
 0x35d   : > { %1252 = vrot.lane.b32.xlu0 %v2868_v44, %s2220_s29 }
 0x35f   : > { %1141 = vrot.lane.b32.xlu1 %v2900_v57, %s2206_s14 }
 0x361   : > { %995 = vrot.lane.b32.xlu0 %v2904_v58, %s2218_s25 }
 0x363   : > { %1244 = vrot.lane.b32.xlu1 %v2900_v57, %s2220_s29 }
 0x365   : > { %1250 = vrot.lane.b32.xlu0 %v2848_v38, %s2220_s29 }
 0x367   : > { %1240 = vrot.lane.b32.xlu1 %v2864_v41, %s2220_s29 }
 0x369   : > { %1248 = vrot.lane.b32.xlu0 %v2824_v34, %s2220_s29 }
 0x36b   : > { %1238 = vrot.lane.b32.xlu1 %v2844_v37, %s2220_s29 }
 0x36d   : > { %1246 = vrot.lane.b32.xlu0 %v2800_v24, %s2220_s29 }
 0x36f   : > { %1236 = vrot.lane.b32.xlu1 %v2820_v31, %s2220_s29 }
 0x371   : > { %1153 = vrot.lane.b32.xlu0 %v2904_v58, %s2206_s14  ;;  %v2928_v59 = vpop.permute.xlu1 %1083 }
 0x373   : > { %v2930_v60 = vpop.permute.xlu0 %1095  ;;  %1234 = vrot.lane.b32.xlu1 %v2798_v22, %s2220_s29 }
 0x375   : > { %1199 = vrot.lane.b32.xlu0 %v2888_v51, %s2219_s26  ;;  %v1029_v61 = vpop.permute.xlu1 %1028 }
 0x377   : > { %v1041_v62 = vpop.permute.xlu0 %1040  ;;  %1189 = vrot.lane.b32.xlu1 %v2900_v57, %s2219_s26 }
 0x378   : > { %v2940_v63 = vsel %vm1052_vm1, %v1029_v61, %v1041_v62  ;;  %v2944_v0 = vsel %vm1052_vm1, %v1041_v62, %v1029_v61 }
 0x379   : > { %1256 = vrot.lane.b32.xlu0 %v2904_v58, %s2220_s29  ;;  %v974_v1 = vpop.permute.xlu1 %973 }
 0x37b   : > { %v986_v3 = vpop.permute.xlu0 %985  ;;  %1093 = vrot.lane.b32.xlu1 %v2900_v57, %s2207_s15 }
 0x37c   : > { %v2952_v4 = vsel %vm997_vm3, %v974_v1, %v986_v3  ;;  %v2956_v5 = vsel %vm997_vm3, %v986_v3, %v974_v1 }
 0x37d   : > { %1103 = vrot.lane.b32.xlu0 %v2888_v51, %s2207_s15  ;;  %v1180_v6 = vpop.permute.xlu1 %1179 }
 0x37f   : > { %v1192_v11 = vpop.permute.xlu0 %1191  ;;  %1187 = vrot.lane.b32.xlu1 %v2884_v50, %s2219_s26 }
 0x380   : > { %v2968_v7 = vsel %vm1203_vm12, %v1180_v6, %v1192_v11  ;;  %v2972_v8 = vsel %vm1203_vm12, %v1192_v11, %v1180_v6 }
 0x381   : > { %1197 = vrot.lane.b32.xlu0 %v2868_v44, %s2219_s26  ;;  %v1132_v10 = vpop.permute.xlu1 %1131 }
 0x383   : > { %v1144_v15 = vpop.permute.xlu0 %1143  ;;  %1091 = vrot.lane.b32.xlu1 %v2884_v50, %s2207_s15 }
 0x384   : > { %v2980_v16 = vsel %vm381_vm13, %v1132_v10, %v1144_v15  ;;  %v2984_v17 = vsel %vm381_vm13, %v1144_v15, %v1132_v10 }
 0x385   : > { %1201 = vrot.lane.b32.xlu0 %v2904_v58, %s2219_s26  ;;  %v1086_v18 = vpop.permute.xlu1 %1085 }
 0x387   : > { %v1098_v19 = vpop.permute.xlu0 %1097  ;;  %1185 = vrot.lane.b32.xlu1 %v2864_v41, %s2219_s26 }
 0x389   : > { %1105 = vrot.lane.b32.xlu0 %v2904_v58, %s2207_s15  ;;  %v1031_v20 = vpop.permute.xlu1 %1030 }
 0x38b   : > { %v1043_v21 = vpop.permute.xlu0 %1042  ;;  %1183 = vrot.lane.b32.xlu1 %v2844_v37, %s2219_s26 }
 0x38c   : > { %v2996_v23 = vsel %vm1052_vm1, %v1031_v20, %v1043_v21  ;;  %v3000_v25 = vsel %vm1052_vm1, %v1043_v21, %v1031_v20 }
 0x38d   : > { %1195 = vrot.lane.b32.xlu0 %v2848_v38, %s2219_s26  ;;  %v976_v27 = vpop.permute.xlu1 %975 }
 0x38f   : > { %v988_v29 = vpop.permute.xlu0 %987  ;;  %1325 = vperm.xlu1 %2134, %v1309_v26  }
 0x390   : > { %v3012_v30 = vsel %vm997_vm3, %v976_v27, %v988_v29  ;;  %v3016_v32 = vsel %vm997_vm3, %v988_v29, %v976_v27  ;;  %v1114_v29 = vsel %vm368_vm14, %v1098_v19, %v1086_v18 }
 0x391   : > { %1330 = vperm.xlu0 %2133, %v1310_v28   ;;  %v1182_v35 = vpop.permute.xlu1 %1181  ;;  %v1108_v28 = vsel %vm368_vm14, %v1086_v18, %v1098_v19 }
 0x393   : > { %v1194_v39 = vpop.permute.xlu0 %1193  ;;  %1315 = vperm.xlu1 %2134, %v1307_v33  }
 0x394   : > { %v3026_v42 = vsel %vm1203_vm12, %v1182_v35, %v1194_v39  ;;  %v3030_v43 = vsel %vm1203_vm12, %v1194_v39, %v1182_v35  ;;  %v1107_v35 = vsel %vm368_vm14, %v2928_v59, %v2930_v60 }
 0x395   : > { %1335 = vperm.xlu0 %2133, %v1311_v36   ;;  %v1134_v45 = vpop.permute.xlu1 %1133  ;;  %v1113_v36 = vsel %vm368_vm14, %v2930_v60, %v2928_v59 }
 0x397   : > { %v1146_v47 = vpop.permute.xlu0 %1145  ;;  %1320 = vperm.xlu1 %2134, %v1308_v40  }
 0x398   : > { %v3040_v48 = vsel %vm381_vm13, %v1134_v45, %v1146_v47  ;;  %v3044_v49 = vsel %vm381_vm13, %v1146_v47, %v1134_v45 }
 0x399   : > { %1340 = vperm.xlu0 %2133, %v1312_v46   ;;  %v1088_v52 = vpop.permute.xlu1 %1087 }
 0x39b   : > { %v1100_v53 = vpop.permute.xlu0 %1099 }
 0x39c   : > { %v1109_v21 = vsel %vm368_vm14, %v1088_v52, %v1100_v53  ;;  %v1115_v26 = vsel %vm368_vm14, %v1100_v53, %v1088_v52 }
 0x39d   : > { %v1033_v54 = vpop.permute.xlu1 %1032 }
 0x39f   : > { %v1045_v55 = vpop.permute.xlu0 %1044 }
 0x3a1   : > { %v3046_v56 = vpop.permute.xlu1 %977 }
 0x3a3   : > { %v3048_v61 = vpop.permute.xlu0 %989 }
 0x3a5   : > { %v1136_v62 = vpop.permute.xlu1 %1135 }
 0x3a7   : > { %v1148_v1 = vpop.permute.xlu0 %1147 }
 0x3a8   : > { %v3052_v3 = vsel %vm381_vm13, %v1136_v62, %v1148_v1  ;;  %v3056_v6 = vsel %vm381_vm13, %v1148_v1, %v1136_v62 }
 0x3a9   : > { %v1090_v11 = vpop.permute.xlu1 %1089 }
 0x3ab   : > { %v1102_v13 = vpop.permute.xlu0 %1101 }
 0x3ac   : > { %v1110_v10 = vsel %vm368_vm14, %v1090_v11, %v1102_v13  ;;  %v1116_v15 = vsel %vm368_vm14, %v1102_v13, %v1090_v11 }
 0x3ad   : > { %1943 = vmatprep.subr.msk.mxu0 %vm325_vm8, %v1110_v10  ;;  %v1035_v20 = vpop.permute.xlu1 %1034 }
 0x3ae   : > { %1944 = vmatpush1.msk.msra.mxu0 %vm324_vm9, %v1116_v15 }
 0x3af   : > { %v1047_v27 = vpop.permute.xlu0 %1046  ;;  %1945 = vmatprep.subr.msk.mxu0 %vm325_vm8, %v1109_v21 }
 0x3b0   : > { %1946 = vmatpush1.msk.msra.mxu0 %vm324_vm9, %v1115_v26  ;;  %v1056_v21 = vsel %vm1052_vm1, %v1035_v20, %v1047_v27  ;;  %v1062_v26 = vsel %vm1052_vm1, %v1047_v27, %v1035_v20 }
 0x3b1   : > { %1947 = vmatprep.subr.msk.mxu0 %vm325_vm8, %v1108_v28  ;;  %v980_v33 = vpop.permute.xlu1 %979 }
 0x3b2   : > { %1948 = vmatpush1.msk.msra.mxu0 %vm324_vm9, %v1114_v29  ;;  %v1055_v29 = vsel %vm1052_vm1, %v1033_v54, %v1045_v55 }
 0x3b3   : > { %v992_v39 = vpop.permute.xlu0 %991  ;;  %1949 = vmatprep.subr.msk.mxu0 %vm325_vm8, %v1107_v35  ;;  %v1061_v35 = vsel %vm1052_vm1, %v1045_v55, %v1033_v54 }
 0x3b4   : > { %1950 = vmatpush1.msk.msra.mxu0 %vm324_vm9, %v1113_v36 }
 0x3b5   : > { %v3094_v18 = vpop.permute.xlu1 %1137 }
 0x3b7   : > { %v3096_v19 = vpop.permute.xlu0 %1149 }
 0x3b9   : > { %v1037_v40 = vpop.permute.xlu1 %1036 }
 0x3bb   : > { %v1049_v45 = vpop.permute.xlu0 %1048 }
 0x3bc   : > { %v1057_v13 = vsel %vm1052_vm1, %v1037_v40, %v1049_v45  ;;  %v1063_v10 = vsel %vm1052_vm1, %v1049_v45, %v1037_v40  ;;  %v1007_v45 = vsel %vm997_vm3, %v992_v39, %v980_v33 }
 0x3bd   : > { %v982_v46 = vpop.permute.xlu1 %981 }
 0x3bf   : > { %v994_v47 = vpop.permute.xlu0 %993 }
 0x3c0   : > { %v1002_v27 = vsel %vm997_vm3, %v982_v46, %v994_v47 }
 0x3c1   : > { %v3098_v52 = vpop.permute.xlu1 %1139 }
 0x3c3   : > { %v3100_v53 = vpop.permute.xlu0 %1151 }
 0x3c5   : > { %v1039_v59 = vpop.permute.xlu1 %1038 }
 0x3c7   : > { %v1051_v60 = vpop.permute.xlu0 %1050 }
 0x3c8   : > { %v1058_v62 = vsel %vm1052_vm1, %v1039_v59, %v1051_v60  ;;  %v1064_v1 = vsel %vm1052_vm1, %v1051_v60, %v1039_v59  ;;  %vm1272_vm1 = vcmp.lt.s32.totalorder %v2326_v12, 13  ;;  %v1294_v12 = vld [vmem:[%s3735_s3 + $0x28] sm:$0xff] }
 0x3c9   : > { %1951 = vmatprep.subr.msk.mxu0 %vm1066_vm5, %v1058_v62  ;;  %v3110_v11 = vpop.permute.xlu1 %1242 }
 0x3ca   : > { %1952 = vmatpush1.msk.msra.mxu0 %vm1065_vm6, %v1064_v1 }
 0x3cb   : > { %v3118_v15 = vpop.permute.xlu0 %1254  ;;  %1953 = vmatprep.subr.msk.mxu0 %vm1066_vm5, %v1057_v13 }
 0x3cc   : > { %1954 = vmatpush1.msk.msra.mxu0 %vm1065_vm6, %v1063_v10 }
 0x3cd   : > { %1955 = vmatprep.subr.msk.mxu0 %vm1066_vm5, %v1056_v21  ;;  %v984_v28 = vpop.permute.xlu1 %983 }
 0x3ce   : > { %1956 = vmatpush1.msk.msra.mxu0 %vm1065_vm6, %v1062_v26 }
 0x3cf   : > { %v3136_v36 = vpop.permute.xlu0 %1252  ;;  %1957 = vmatprep.subr.msk.mxu0 %vm1066_vm5, %v1055_v29 }
 0x3d0   : > { %1958 = vmatpush1.msk.msra.mxu0 %vm1065_vm6, %v1061_v35 }
 0x3d1   : > { %1959 = vmatprep.subr.msk.mxu0 %vm1066_vm5, %v2996_v23  ;;  %v1142_v20 = vpop.permute.xlu1 %1141 }
 0x3d2   : > { %1960 = vmatpush1.msk.msra.mxu0 %vm1065_vm6, %v3000_v25 }
 0x3d3   : > { %v996_v54 = vpop.permute.xlu0 %995  ;;  %1961 = vmatprep.subr.msk.mxu0 %vm1066_vm5, %v2940_v63  ;;  %v1008_v63 = vsel %vm997_vm3, %v994_v47, %v982_v46  ;;  %v1000_v46 = vsel %vm997_vm3, %v3046_v56, %v3048_v61  ;;  %v1006_v47 = vsel %vm997_vm3, %v3048_v61, %v3046_v56  ;;  %vm1271_vm5 = vcmp.lt.s32.totalorder %v2332_v14, 13  ;;  %v1295_v14 = vld [vmem:[%s3735_s3 + $0x30] sm:$0xff] }
 0x3d4   : > { %v1003_v55 = vsel %vm997_vm3, %v984_v28, %v996_v54  ;;  %v1009_v23 = vsel %vm997_vm3, %v996_v54, %v984_v28  ;;  %1962 = vmatpush1.msk.msra.mxu0 %vm1065_vm6, %v2944_v0  ;;  %v1001_v0 = vsel %vm997_vm3, %v980_v33, %v992_v39  ;;  %v1158_v39 = vsel %vm381_vm13, %v3094_v18, %v3096_v19  ;;  %v1293_v54 = vld [vmem:[%s3735_s3 + $0x20] sm:$0xff] }
 0x3d5   : > { %1963 = vmatprep.subr.msk.mxu0 %vm1011_vm10, %v1003_v55  ;;  %v1245_v25 = vpop.permute.xlu1 %1244  ;;  %vm1258_vm3 = vcmp.lt.s32.totalorder %v2321_v9, 125 }
 0x3d6   : > { %1964 = vmatpush1.msk.msra.mxu0 %vm1010_vm15, %v1009_v23  ;;  %v1269_v62 = vsel %vm1258_vm3, %v3118_v15, %v3110_v11 }
 0x3d7   : > { %v3168_v40 = vpop.permute.xlu0 %1250  ;;  %1965 = vmatprep.subr.msk.mxu0 %vm1011_vm10, %v1002_v27  ;;  %v1292_v27 = vld [vmem:[%s3735_s3 + $0x18] sm:$0xff] }
 0x3d8   : > { %1966 = vmatpush1.msk.msra.mxu0 %vm1010_vm15, %v1008_v63  ;;  %v1296_v63 = vld [vmem:[%s3735_s3 + $0x38] sm:$0xff] }
 0x3d9   : > { %1967 = vmatprep.subr.msk.mxu0 %vm1011_vm10, %v1001_v0  ;;  %v1241_v59 = vpop.permute.xlu1 %1240  ;;  %v1297_v0 = vld [vmem:[%s3735_s3 + $0x40] sm:$0xff] }
 0x3da   : > { %1968 = vmatpush1.msk.msra.mxu0 %vm1010_vm15, %v1007_v45  ;;  %v1262_v1 = vsel %vm1258_vm3, %v1241_v59, %v3136_v36  ;;  %v1298_v45 = vld [vmem:[%s3735_s3 + $0x48] sm:$0xff] }
 0x3db   : > { %v3190_v60 = vpop.permute.xlu0 %1248  ;;  %1969 = vmatprep.subr.msk.mxu0 %vm1011_vm10, %v1000_v46  ;;  %v1300_v46 = vld [vmem:[%s3735_s3 + $0x58] sm:$0xff] }
 0x3dc   : > { %1970 = vmatpush1.msk.msra.mxu0 %vm1010_vm15, %v1006_v47  ;;  %v1301_v47 = vld [vmem:[%s3735_s3 + $0x60] sm:$0xff] }
 0x3dd   : > { %1971 = vmatprep.subr.msk.mxu0 %vm1011_vm10, %v3012_v30  ;;  %v1239_v33 = vpop.permute.xlu1 %1238 }
 0x3de   : > { %1972 = vmatpush1.msk.msra.mxu0 %vm1010_vm15, %v3016_v32 }
 0x3df   : > { %v3203_v56 = vpop.permute.xlu0 %1246  ;;  %1973 = vmatprep.subr.msk.mxu0 %vm1011_vm10, %v2952_v4 }
 0x3e0   : > { %1974 = vmatpush1.msk.msra.mxu0 %vm1010_vm15, %v2956_v5 }
 0x3e1   : > { %1975 = vmatprep.subr.msk.mxu0 %vm1217_vm4, %v3030_v43  ;;  %v1237_v30 = vpop.permute.xlu1 %1236 }
 0x3e2   : > { %1976 = vmatpush2.msk.msra.mxu0 %vm1216_vm11, %v3026_v42  ;;  %v1165_v42 = vsel %vm381_vm13, %v3100_v53, %v3098_v52 }
 0x3e3   : > { %v1154_v32 = vpop.permute.xlu0 %1153  ;;  %1977 = vmatprep.subr.msk.mxu0 %vm1217_vm4, %v2972_v8  ;;  %v1159_v8 = vsel %vm381_vm13, %v3098_v52, %v3100_v53 }
 0x3e4   : > { %v1160_v4 = vsel %vm381_vm13, %v1142_v20, %v1154_v32  ;;  %v1166_v5 = vsel %vm381_vm13, %v1154_v32, %v1142_v20  ;;  %1978 = vmatpush2.msk.msra.mxu0 %vm1216_vm11, %v2968_v7  ;;  %v1164_v7 = vsel %vm381_vm13, %v3096_v19, %v3094_v18 }
 0x3e5   : > { %1979 = vmatprep.subr.msk.mxu0 %vm355_vm0, %v1166_v5  ;;  %v1235_v43 = vpop.permute.xlu1 %1234 }
 0x3e6   : > { %1980 = vmatpush2.msk.msra.mxu0 %vm354_vm2, %v1160_v4  ;;  %v1265_v10 = vsel %vm1258_vm3, %v3203_v56, %v1235_v43 }
 0x3e7   : > { %v3240_v61 = vpop.permute.xlu0 %1199  ;;  %1981 = vmatprep.subr.msk.mxu0 %vm355_vm0, %v1165_v42 }
 0x3e8   : > { %1982 = vmatpush2.msk.msra.mxu0 %vm354_vm2, %v1159_v8 }
 0x3e9   : > { %1983 = vmatprep.subr.msk.mxu0 %vm355_vm0, %v1164_v7  ;;  %v1190_v52 = vpop.permute.xlu1 %1189 }
 0x3ea   : > { %1984 = vmatpush2.msk.msra.mxu0 %vm354_vm2, %v1158_v39 }
 0x3eb   : > { %v1257_v53 = vpop.permute.xlu0 %1256  ;;  %1985 = vmatprep.subr.msk.mxu0 %vm355_vm0, %v3056_v6 }
 0x3ec   : > { %v1264_v18 = vsel %vm1258_vm3, %v1245_v25, %v1257_v53  ;;  %v1270_v19 = vsel %vm1258_vm3, %v1257_v53, %v1245_v25  ;;  %1986 = vmatpush2.msk.msra.mxu0 %vm354_vm2, %v3052_v3  ;;  %v1291_v25 = vld [vmem:[%s3735_s3 + $0x10] sm:$0xff] }
 0x3ed   : > { %1987 = vmatprep.subr.msk.mxu0 %vm355_vm0, %v3044_v49  ;;  %1995 = vmatprep.subr.msk.mxu1 %vm1272_vm1, %v1270_v19  ;;  %v1094_v6 = vpop.permute.xlu1 %1093  ;;  %v1263_v49 = vsel %vm1258_vm3, %v3110_v11, %v3118_v15  ;;  %v1267_v11 = vsel %vm1258_vm3, %v3168_v40, %v1239_v33 }
 0x3ee   : > { %1988 = vmatpush2.msk.msra.mxu0 %vm354_vm2, %v3040_v48  ;;  %1996 = vmatpush1.msk.msra.mxu1 %vm1271_vm5, %v1264_v18  ;;  %v1268_v48 = vsel %vm1258_vm3, %v3136_v36, %v1241_v59  ;;  %v1302_v59 = vld [vmem:[%s3735_s3 + $0x68] sm:$0xff] }
 0x3ef   : > { %v1104_v3 = vpop.permute.xlu0 %1103  ;;  %1989 = vmatprep.subr.msk.mxu0 %vm355_vm0, %v2984_v17  ;;  %1997 = vmatprep.subr.msk.mxu1 %vm1272_vm1, %v1269_v62  ;;  %vm1343_vm0 = vcmask 654336  }
 0x3f0   : > { %1990 = vmatpush2.msk.msra.mxu0 %vm354_vm2, %v2980_v16  ;;  %1998 = vmatpush1.msk.msra.mxu1 %vm1271_vm5, %v1263_v49  ;;  %v1261_v16 = vsel %vm1258_vm3, %v1239_v33, %v3168_v40  ;;  %v1299_v40 = vld [vmem:[%s3735_s3 + $0x50] sm:$0xff]  ;;  %vm1799_vm2 = vcmask 523264  }
 0x3f1   : > { %1410 = vmatprep.subr.mxu0 %v2904_v58  ;;  %1999 = vmatprep.subr.msk.mxu1 %vm1272_vm1, %v1268_v48  ;;  %v1188_v17 = vpop.permute.xlu1 %1187  ;;  %v1266_v58 = vsel %vm1258_vm3, %v3190_v60, %v1237_v30  ;;  %v1303_v33 = vld [vmem:[%s3735_s3 + $0x70] sm:$0xff] }
 0x3f2   : > { %1411 = vmatpush2.msra.mxu0 %v2900_v57  ;;  %2000 = vmatpush1.msk.msra.mxu1 %vm1271_vm5, %v1262_v1  ;;  %v1260_v57 = vsel %vm1258_vm3, %v1237_v30, %v3190_v60  ;;  %v1305_v60 = vld [vmem:[%s3735_s3 + $0x80] sm:$0xff]  ;;  %v1306_v30 = vld [vmem:[%s3735_s3 + $0x88] sm:$0xff] }
 0x3f3   : > { %v1198_v13 = vpop.permute.xlu0 %1197  ;;  %1412 = vmatprep.subr.mxu0 %v2888_v51  ;;  %2001 = vmatprep.subr.msk.mxu1 %vm1272_vm1, %v1267_v11 }
 0x3f4   : > { %1413 = vmatpush2.msra.mxu0 %v2884_v50  ;;  %2002 = vmatpush1.msk.msra.mxu1 %vm1271_vm5, %v1261_v16  ;;  %v1259_v50 = vsel %vm1258_vm3, %v1235_v43, %v3203_v56  ;;  %v1304_v56 = vld [vmem:[%s3735_s3 + $0x78] sm:$0xff] }
 0x3f5   : > { %1414 = vmatprep.subr.mxu0 %v2868_v44  ;;  %2003 = vmatprep.subr.msk.mxu1 %vm1272_vm1, %v1266_v58  ;;  %v1092_v51 = vpop.permute.xlu1 %1091 }
 0x3f6   : > { %1415 = vmatpush2.msra.mxu0 %v2864_v41  ;;  %2004 = vmatpush1.msk.msra.mxu1 %vm1271_vm5, %v1260_v57  ;;  %v1214_v41 = vsel %vm1203_vm12, %v3240_v61, %v1188_v17  ;;  %v1111_v29 = vsel %vm368_vm14, %v1092_v51, %v1104_v3  ;;  %v1117_v35 = vsel %vm368_vm14, %v1104_v3, %v1092_v51 }
 0x3f7   : > { %v1202_v15 = vpop.permute.xlu0 %1201  ;;  %1416 = vmatprep.subr.mxu0 %v2848_v38  ;;  %2005 = vmatprep.subr.msk.mxu1 %vm1272_vm1, %v1265_v10 }
 0x3f8   : > { %v1209_v44 = vsel %vm1203_vm12, %v1190_v52, %v1202_v15  ;;  %v1215_v21 = vsel %vm1203_vm12, %v1202_v15, %v1190_v52  ;;  %1417 = vmatpush2.msra.mxu0 %v2844_v37  ;;  %2006 = vmatpush1.msk.msra.mxu1 %vm1271_vm5, %v1259_v50  ;;  %v1208_v37 = vsel %vm1203_vm12, %v1188_v17, %v3240_v61 }
 0x3f9   : > { %1418 = vmatprep.subr.mxu0 %v2824_v34  ;;  %2007 = vmatprep.subr.msk.mxu1 %vm1217_vm4, %v1215_v21  ;;  %v1186_v38 = vpop.permute.xlu1 %1185 }
 0x3fa   : > { %1419 = vmatpush2.msra.mxu0 %v2820_v31  ;;  %2008 = vmatpush1.msk.msra.mxu1 %vm1216_vm11, %v1209_v44  ;;  %v1213_v34 = vsel %vm1203_vm12, %v1198_v13, %v1186_v38 }
 0x3fb   : > { %v1106_v26 = vpop.permute.xlu0 %1105  ;;  %1420 = vmatprep.subr.mxu0 %v2800_v24  ;;  %2009 = vmatprep.subr.msk.mxu1 %vm1217_vm4, %v1214_v41  ;;  %v1207_v24 = vsel %vm1203_vm12, %v1186_v38, %v1198_v13 }
 0x3fc   : > { %v1112_v28 = vsel %vm368_vm14, %v1094_v6, %v1106_v26  ;;  %v1118_v31 = vsel %vm368_vm14, %v1106_v26, %v1094_v6  ;;  %1421 = vmatpush2.msra.mxu0 %v2798_v22  ;;  %2010 = vmatpush1.msk.msra.mxu1 %vm1216_vm11, %v1208_v37  ;;  %v1289_v22 = vld [vmem:[%s3735_s3] sm:$0xff] }
 0x3fd   : > { %1991 = vmatprep.subr.msk.mxu0 %vm325_vm8, %v1112_v28  ;;  %2011 = vmatprep.subr.msk.mxu1 %vm1217_vm4, %v1213_v34  ;;  %v1184_v36 = vpop.permute.xlu1 %1183 }
 0x3fe   : > { %1992 = vmatpush2.msk.msra.mxu0 %vm324_vm9, %v1118_v31  ;;  %2012 = vmatpush1.msk.msra.mxu1 %vm1216_vm11, %v1207_v24 }
 0x3ff   : > { %v1196_v20 = vpop.permute.xlu0 %1195  ;;  %1993 = vmatprep.subr.msk.mxu0 %vm325_vm8, %v1111_v29 }
 0x400   : > { %v1206_v55 = vsel %vm1203_vm12, %v1184_v36, %v1196_v20  ;;  %v1212_v23 = vsel %vm1203_vm12, %v1196_v20, %v1184_v36  ;;  %1994 = vmatpush2.msk.msra.mxu0 %vm324_vm9, %v1117_v35 }
 0x401   : > { %1427 = vmatmul.mubr.f32.vlgmr.msra.gmra.mxu0 %v1289_v22  ;;  %2013 = vmatprep.subr.msk.mxu1 %vm1217_vm4, %v1212_v23 }
 0x402   : > { %2014 = vmatpush1.msk.msra.mxu1 %vm1216_vm11, %v1206_v55  ;;  %1432 = vmatprep.mubr.f32.mxu0 %v1293_v54 }
 0x403   : > { %2015 = vmatmul.mubr.msk.f32.vlgmr.msra.gmra.mxu1 %vm1343_vm0, %v1291_v25 }
 0x404   : > { %1533 = vmatprep.mubr.f32.mxu1 %v2208_v2 }
 0x405   : > { %1433 = vmatmul.mubr.f32.gmra.mxu0 %v1292_v27 }
 0x406   : > { %1438 = vmatprep.mubr.f32.mxu0 %v1296_v63 }
 0x407   : > { %2016 = vmatmul.mubr.msk.f32.gmra.mxu1 %vm1343_vm0, %v1294_v12 }
 0x408   : > { %1539 = vmatprep.mubr.f32.mxu1 %v2208_v2 }
 0x409   : > { %1439 = vmatmul.mubr.f32.gmra.mxu0 %v1295_v14 }
 0x40a   : > { %1444 = vmatprep.mubr.f32.mxu0 %v1299_v40  ;;  %v1326_v43 = vpop.permute.xlu1 %1325 }
 0x40b   : > { %2017 = vmatmul.mubr.msk.f32.gmra.mxu1 %vm1343_vm0, %v1297_v0 }
 0x40c   : > { %1545 = vmatprep.mubr.f32.mxu1 %v2208_v2  ;;  %v1331_v39 = vpop.permute.xlu0 %1330 }
 0x40d   : > { %1445 = vmatmul.mubr.f32.gmra.mxu0 %v1298_v45 }
 0x40e   : > { %1450 = vmatprep.mubr.f32.mxu0 %v1302_v59  ;;  %v1316_v18 = vpop.permute.xlu1 %1315 }
 0x40f   : > { %2018 = vmatmul.mubr.msk.f32.gmra.mxu1 %vm1343_vm0, %v1300_v46 }
 0x410   : > { %1551 = vmatprep.mubr.f32.mxu1 %v2208_v2  ;;  %v1336_v17 = vpop.permute.xlu0 %1335 }
 0x411   : > { %1451 = vmatmul.mubr.f32.gmra.mxu0 %v1301_v47 }
 0x412   : > { %1456 = vmatprep.mubr.f32.mxu0 %v1305_v60  ;;  %v1321_v51 = vpop.permute.xlu1 %1320 }
 0x413   : > { %2019 = vmatmul.mubr.msk.f32.gmra.mxu1 %vm1343_vm0, %v1303_v33 }
 0x414   : > { %1557 = vmatprep.mubr.f32.mxu1 %v2208_v2  ;;  %v1341_v35 = vpop.permute.xlu0 %1340 }
 0x415   : > { %1457 = vmatmul.mubr.f32.gmra.mxu0 %v1304_v56 }
 0x417   : > { %2020 = vmatmul.mubr.msk.f32.gmra.mxu1 %vm1343_vm0, %v1306_v30 }
 0x4c1   : > { %v1428_v32 = vpop.f32.mrf.mxu0 }
 0x4c2   : > { %v1429_v3 = vadd.f32 %v1428_v32, %v1316_v18 }
 0x4c3   : > { %v1430_v4 = vpop.f32.mrf.mxu0  ;;  %v1529_v5 = vpop.f32.mrf.mxu1 }
 0x4c4   : > { %v1431_v13 = vadd.f32 %v1430_v4, %v1316_v18  ;;  %v3471_v21 = vadd.f32 %v1529_v5, %v1429_v3  ;;  %v1686_v18 = vld [vmem:[%s3739_s7 + $0x70] sm:$0xff]  ;;  %v1684_v3 = vld [vmem:[%s3739_s7 + $0x60] sm:$0xff] }
 0x4c5   : > { %v1434_v42 = vpop.f32.mrf.mxu0  ;;  %v1531_v8 = vpop.f32.mrf.mxu1 }
 0x4c6   : > { %v1435_v38 = vadd.f32 %v1434_v42, %v1321_v51  ;;  %v3479_v31 = vadd.f32 %v1531_v8, %v1431_v13  ;;  %v1564_v23 = vmax.f32 %v3471_v21, 0.0  ;;  %v1703_v8 = vld [vmem:[%s3739_s7 + $0xf8] sm:$0xff]  ;;  %v1697_v13 = vld [vmem:[%s3739_s7 + $0xc8] sm:$0xff] }
 0x4c7   : > { %v1436_v61 = vpop.f32.mrf.mxu0  ;;  %v1535_v7 = vpop.f32.mrf.mxu1  ;;  %2074 = vmatprep.subr.mxu1 %v1703_v8  ;;  %2024 = vmatprep.subr.mxu0 %v1703_v8 }
 0x4c8   : > { %v1437_v24 = vadd.f32 %v1436_v61, %v1321_v51  ;;  %v3487_v25 = vadd.f32 %v1535_v7, %v1435_v38  ;;  %v1565_v45 = vmax.f32 %v3479_v31, 0.0  ;;  %v1687_v61 = vld [vmem:[%s3739_s7 + $0x78] sm:$0xff]  ;;  %v1702_v7 = vld [vmem:[%s3739_s7 + $0xf0] sm:$0xff]  ;;  %v1680_v51 = vld [vmem:[%s3739_s7 + $0x40] sm:$0xff] }
 0x4c9   : > { %v1440_v52 = vpop.f32.mrf.mxu0  ;;  %v1537_v53 = vpop.f32.mrf.mxu1  ;;  %2090 = vmatpush3.msra.mxu1 %v1687_v61  ;;  %2025 = vmatpush3.msra.mxu0 %v1687_v61  ;;  %v1679_v38 = vld [vmem:[%s3739_s7 + $0x38] sm:$0xff] }
 0x4ca   : > { %v1441_v2 = vadd.f32 %v1440_v52, %v1326_v43  ;;  %v3497_v59 = vadd.f32 %v1537_v53, %v1437_v24  ;;  %v1566_v4 = vmax.f32 %v3487_v25, 0.0  ;;  %2075 = vmatprep.subr.mxu1 %v1702_v7  ;;  %2026 = vmatprep.subr.mxu0 %v1702_v7  ;;  %v1692_v24 = vld [vmem:[%s3739_s7 + $0xa0] sm:$0xff] }
 0x4cb   : > { %v1442_v19 = vpop.f32.mrf.mxu0  ;;  %v1541_v6 = vpop.f32.mrf.mxu1  ;;  %2091 = vmatpush3.msra.mxu1 %v1686_v18  ;;  %2027 = vmatpush3.msra.mxu0 %v1686_v18 }
 0x4cc   : > { %v1443_v62 = vadd.f32 %v1442_v19, %v1326_v43  ;;  %v3463_v49 = vadd.f32 %v1541_v6, %v1441_v2  ;;  %v1701_v2 = vld [vmem:[%s3739_s7 + $0xe8] sm:$0xff] }
 0x4cd   : > { %v1446_v48 = vpop.f32.mrf.mxu0  ;;  %v1543_v1 = vpop.f32.mrf.mxu1  ;;  %v1685_v6 = vld [vmem:[%s3739_s7 + $0x68] sm:$0xff]  ;;  %2076 = vmatprep.subr.mxu1 %v1701_v2  ;;  %2028 = vmatprep.subr.mxu0 %v1701_v2 }
 0x4ce   : > { %v1447_v11 = vadd.f32 %v1446_v48, %v1331_v39  ;;  %v3465_v16 = vadd.f32 %v1543_v1, %v1443_v62  ;;  %v1568_v10 = vmax.f32 %v3463_v49, 0.0  ;;  %v1700_v62 = vld [vmem:[%s3739_s7 + $0xe0] sm:$0xff]  ;;  %2092 = vmatpush3.msra.mxu1 %v1685_v6  ;;  %v1699_v48 = vld [vmem:[%s3739_s7 + $0xd8] sm:$0xff]  ;;  %2029 = vmatpush3.msra.mxu0 %v1685_v6 }
 0x4cf   : > { %v1448_v58 = vpop.f32.mrf.mxu0  ;;  %v1547_v57 = vpop.f32.mrf.mxu1  ;;  %2077 = vmatprep.subr.mxu1 %v1700_v62  ;;  %v1683_v1 = vld [vmem:[%s3739_s7 + $0x58] sm:$0xff]  ;;  %2030 = vmatprep.subr.mxu0 %v1700_v62 }
 0x4d0   : > { %v1569_v50 = vmax.f32 %v3465_v16, 0.0  ;;  %v1449_v15 = vadd.f32 %v1448_v58, %v1331_v39  ;;  %v3469_v44 = vadd.f32 %v1547_v57, %v1447_v11  ;;  %v1567_v39 = vmax.f32 %v3497_v59, 0.0  ;;  %2093 = vmatpush3.msra.mxu1 %v1684_v3  ;;  %v1682_v11 = vld [vmem:[%s3739_s7 + $0x50] sm:$0xff]  ;;  %v1681_v58 = vld [vmem:[%s3739_s7 + $0x48] sm:$0xff]  ;;  %2031 = vmatpush3.msra.mxu0 %v1684_v3  ;;  %v1696_v57 = vld [vmem:[%s3739_s7 + $0xc0] sm:$0xff] }
 0x4d1   : > { %v1452_v41 = vpop.f32.mrf.mxu0  ;;  %v1549_v37 = vpop.f32.mrf.mxu1  ;;  %2078 = vmatprep.subr.mxu1 %v1699_v48  ;;  %2032 = vmatprep.subr.mxu0 %v1699_v48 }
 0x4d2   : > { %v2135_v26 = vpack.i.bf16 %v1569_v50, %v1568_v10  ;;  %v1453_v34 = vadd.f32 %v1452_v41, %v1336_v17  ;;  %v3477_v28 = vadd.f32 %v1549_v37, %v1449_v15  ;;  %v1570_v36 = vmax.f32 %v3469_v44, 0.0  ;;  %2094 = vmatpush3.msra.mxu1 %v1683_v1  ;;  %2033 = vmatpush3.msra.mxu0 %v1683_v1  ;;  %v1695_v15 = vld [vmem:[%s3739_s7 + $0xb8] sm:$0xff]  ;;  %v1694_v41 = vld [vmem:[%s3739_s7 + $0xb0] sm:$0xff] }
 0x4d3   : > { %v1454_v29 = vpop.f32.mrf.mxu0  ;;  %v1553_v22 = vpop.f32.mrf.mxu1  ;;  %v1678_v37 = vld [vmem:[%s3739_s7 + $0x30] sm:$0xff] }
 0x4d4   : > { %v1571_v20 = vmax.f32 %v3477_v28, 0.0  ;;  %v1455_v54 = vadd.f32 %v1454_v29, %v1336_v17  ;;  %v3483_v55 = vadd.f32 %v1553_v22, %v1453_v34  ;;  %2136 = vrot.lane.b32.xlu1 %v2135_v26, %s2203_s11  ;;  %v1698_v17 = vld [vmem:[%s3739_s7 + $0xd0] sm:$0xff]  ;;  %v1693_v26 = vld [vmem:[%s3739_s7 + $0xa8] sm:$0xff]  ;;  %v1676_v29 = vld [vmem:[%s3739_s7 + $0x20] sm:$0xff] }
 0x4d5   : > { %v1458_v27 = vpop.f32.mrf.mxu0  ;;  %v1555_v63 = vpop.f32.mrf.mxu1  ;;  %2079 = vmatprep.subr.mxu1 %v1698_v17  ;;  %2034 = vmatprep.subr.mxu0 %v1698_v17  ;;  %v1677_v34 = vld [vmem:[%s3739_s7 + $0x28] sm:$0xff]  ;;  %v1691_v22 = vld [vmem:[%s3739_s7 + $0x98] sm:$0xff] }
 0x4d6   : > { %v2140_v12 = vpack.i.bf16 %v1571_v20, %v1570_v36  ;;  %v1572_v14 = vmax.f32 %v3483_v55, 0.0  ;;  %v1459_v40 = vadd.f32 %v1458_v27, %v1341_v35  ;;  %v3494_v0 = vadd.f32 %v1555_v63, %v1455_v54  ;;  %2095 = vmatpush3.msra.mxu1 %v1682_v11  ;;  %2035 = vmatpush3.msra.mxu0 %v1682_v11  ;;  %v1690_v54 = vld [vmem:[%s3739_s7 + $0x90] sm:$0xff]  ;;  %v1689_v63 = vld [vmem:[%s3739_s7 + $0x88] sm:$0xff] }
 0x4d7   : > { %v1460_v46 = vpop.f32.mrf.mxu0  ;;  %v1559_v47 = vpop.f32.mrf.mxu1  ;;  %2080 = vmatprep.subr.mxu1 %v1697_v13  ;;  %2036 = vmatprep.subr.mxu0 %v1697_v13  ;;  %v1674_v27 = vld [vmem:[%s3739_s7 + $0x10] sm:$0xff] }
 0x4d8   : > { %v2145_v60 = vpack.i.bf16 %v1572_v14, %v1564_v23  ;;  %v1573_v33 = vmax.f32 %v3494_v0, 0.0  ;;  %v1461_v56 = vadd.f32 %v1460_v46, %v1341_v35  ;;  %v3504_v30 = vadd.f32 %v1559_v47, %v1459_v40  ;;  %2141 = vrot.lane.b32.xlu0 %v2140_v12, %s2203_s11  ;;  %2096 = vmatpush3.msra.mxu1 %v1681_v58  ;;  %v1675_v35 = vld [vmem:[%s3739_s7 + $0x18] sm:$0xff]  ;;  %v1673_v12 = vld [vmem:[%s3739_s7 + $0x8] sm:$0xff]  ;;  %v1688_v40 = vld [vmem:[%s3739_s7 + $0x80] sm:$0xff] }
 0x4d9   : > { %v1561_v32 = vpop.f32.mrf.mxu1  ;;  %2081 = vmatprep.subr.mxu1 %v1696_v57  ;;  %2037 = vmatpush3.msra.mxu0 %v1681_v58  ;;  %v1672_v46 = vld [vmem:[%s3739_s7] sm:$0xff] }
 0x4da   : > { %v2150_v5 = vpack.i.bf16 %v1573_v33, %v1565_v45  ;;  %v1574_v43 = vmax.f32 %v3504_v30, 0.0  ;;  %v3513_v42 = vadd.f32 %v1561_v32, %v1461_v56  ;;  %2146 = vrot.lane.b32.xlu1 %v2145_v60, %s2203_s11  ;;  %2097 = vmatpush3.msra.mxu1 %v1680_v51 }
 0x4db   : > { %2082 = vmatprep.subr.mxu1 %v1695_v15  ;;  %2038 = vmatprep.subr.mxu0 %v1696_v57 }
 0x4dc   : > { %v2155_v52 = vpack.i.bf16 %v1574_v43, %v1566_v4  ;;  %v1575_v53 = vmax.f32 %v3513_v42, 0.0  ;;  %2151 = vrot.lane.b32.xlu0 %v2150_v5, %s2203_s11  ;;  %2098 = vmatpush3.msra.mxu1 %v1679_v38 }
 0x4dd   : > { %2083 = vmatprep.subr.mxu1 %v1694_v41  ;;  %2039 = vmatpush3.msra.mxu0 %v1680_v51 }
 0x4de   : > { %v2160_v19 = vpack.i.bf16 %v1575_v53, %v1567_v39  ;;  %2156 = vrot.lane.b32.xlu1 %v2155_v52, %s2203_s11  ;;  %2099 = vmatpush3.msra.mxu1 %v1678_v37 }
 0x4df   : > { %2040 = vmatprep.subr.mxu0 %v1695_v15  ;;  %2084 = vmatprep.subr.mxu1 %v1693_v26 }
 0x4e0   : > { %2161 = vrot.lane.b32.xlu0 %v2160_v19, %s2203_s11  ;;  %2041 = vmatpush3.msra.mxu0 %v1679_v38 }
 0x4e1   : > { %2100 = vmatpush3.msra.mxu1 %v1677_v34  ;;  %2042 = vmatprep.subr.mxu0 %v1694_v41 }
 0x4e2   : > { %2085 = vmatprep.subr.mxu1 %v1692_v24  ;;  %2043 = vmatpush3.msra.mxu0 %v1678_v37 }
 0x4e3   : > { %2101 = vmatpush3.msra.mxu1 %v1676_v29  ;;  %2044 = vmatprep.subr.mxu0 %v1693_v26 }
 0x4e4   : > { %2086 = vmatprep.subr.mxu1 %v1691_v22  ;;  %2045 = vmatpush3.msra.mxu0 %v1677_v34 }
 0x4e5   : > { %2102 = vmatpush3.msra.mxu1 %v1675_v35  ;;  %2046 = vmatprep.subr.mxu0 %v1692_v24 }
 0x4e6   : > { %2047 = vmatpush3.msra.mxu0 %v1676_v29  ;;  %2087 = vmatprep.subr.mxu1 %v1690_v54 }
 0x4e7   : > { %2048 = vmatprep.subr.mxu0 %v1691_v22  ;;  %2103 = vmatpush3.msra.mxu1 %v1674_v27 }
 0x4e8   : > { %2049 = vmatpush3.msra.mxu0 %v1675_v35  ;;  %2088 = vmatprep.subr.mxu1 %v1689_v63 }
 0x4e9   : > { %2050 = vmatprep.subr.mxu0 %v1690_v54  ;;  %2104 = vmatpush3.msra.mxu1 %v1673_v12 }
 0x4ea   : > { %2051 = vmatpush3.msra.mxu0 %v1674_v27  ;;  %2089 = vmatprep.subr.mxu1 %v1688_v40 }
 0x4eb   : > { %2052 = vmatprep.subr.mxu0 %v1689_v63  ;;  %2105 = vmatpush3.msra.mxu1 %v1672_v46 }
 0x4ec   : > { %2053 = vmatpush3.msra.mxu0 %v1673_v12 }
 0x4ed   : > { %2054 = vmatprep.subr.mxu0 %v1688_v40 }
 0x4ee   : > { %2055 = vmatpush3.msra.mxu0 %v1672_v46 }
 0x546   : > { %v2137_v47 = vpop.permute.xlu1 %2136 }
 0x547   : > { %v2139_v60 = vunpack.i.h.bf16 %v2137_v47  ;;  %v2138_v56 = vunpack.i.l.bf16 %v2137_v47 }
 0x549   : > { %v1602_v32 = vsel %vm411_vm7, %v2138_v56, %v2139_v60  ;;  %v1608_v5 = vsel %vm411_vm7, %v2139_v60, %v2138_v56 }
 0x54a   : > { %v1616_v8 = vmax.f32 %v1568_v10, %v1602_v32  ;;  %v1617_v61 = vmax.f32 %v1569_v50, %v1608_v5  ;;  %v2142_v7 = vpop.permute.xlu0 %2141 }
 0x54b   : > { %v2144_v52 = vunpack.i.h.bf16 %v2142_v7  ;;  %v2143_v18 = vunpack.i.l.bf16 %v2142_v7 }
 0x54c   : > { %v2147_v2 = vpop.permute.xlu1 %2146  ;;  %v2165_v19 = vpack.i.bf16 %v1617_v61, %v1616_v8 }
 0x54d   : > { %v1603_v6 = vsel %vm411_vm7, %v2143_v18, %v2144_v52  ;;  %v1609_v62 = vsel %vm411_vm7, %v2144_v52, %v2143_v18  ;;  %v2149_v10 = vunpack.i.h.bf16 %v2147_v2  ;;  %v2148_v50 = vunpack.i.l.bf16 %v2147_v2 }
 0x54e   : > { %v3639_v3 = vmax.f32 %v1570_v36, %v1603_v6  ;;  %v1619_v49 = vmax.f32 %v1571_v20, %v1609_v62  ;;  %v2152_v16 = vpop.permute.xlu0 %2151  ;;  %2166 = vrot.lane.b32.xlu1 %v2165_v19, %s2206_s14 }
 0x54f   : > { %v2154_v48 = vunpack.i.h.bf16 %v2152_v16  ;;  %v2153_v1 = vunpack.i.l.bf16 %v2152_v16 }
 0x550   : > { %v2157_v17 = vpop.permute.xlu1 %2156  ;;  %v2170_v11 = vpack.i.bf16 %v1619_v49, %v3639_v3 }
 0x551   : > { %v1600_v13 = vsel %vm411_vm7, %v2148_v50, %v2153_v1  ;;  %v1604_v44 = vsel %vm411_vm7, %v2149_v10, %v2154_v48  ;;  %v1606_v28 = vsel %vm411_vm7, %v2153_v1, %v2148_v50  ;;  %v1610_v36 = vsel %vm411_vm7, %v2154_v48, %v2149_v10 }
 0x552   : > { %v3655_v20 = vmax.f32 %v1564_v23, %v1600_v13  ;;  %v3659_v58 = vmax.f32 %v1565_v45, %v1606_v28  ;;  %v3663_v57 = vmax.f32 %v1572_v14, %v1604_v44  ;;  %v1621_v51 = vmax.f32 %v1573_v33, %v1610_v36  ;;  %2171 = vrot.lane.b32.xlu0 %v2170_v11, %s2206_s14  ;;  %v2162_v15 = vpop.permute.xlu0 %2161 }
 0x553   : > { %v2159_v38 = vunpack.i.h.bf16 %v2157_v17  ;;  %v2158_v41 = vunpack.i.l.bf16 %v2157_v17  ;;  %v2164_v37 = vunpack.i.h.bf16 %v2162_v15  ;;  %v2163_v21 = vunpack.i.l.bf16 %v2162_v15 }
 0x554   : > { %v2180_v23 = vpack.i.bf16 %v1621_v51, %v3659_v58  ;;  %v2175_v31 = vpack.i.bf16 %v3663_v57, %v3655_v20 }
 0x555   : > { %v1601_v55 = vsel %vm411_vm7, %v2158_v41, %v2163_v21  ;;  %v1605_v14 = vsel %vm411_vm7, %v2159_v38, %v2164_v37  ;;  %v1607_v0 = vsel %vm411_vm7, %v2163_v21, %v2158_v41  ;;  %v1611_v45 = vsel %vm411_vm7, %v2164_v37, %v2159_v38 }
 0x556   : > { %v1614_v33 = vmax.f32 %v1566_v4, %v1601_v55  ;;  %v1615_v26 = vmax.f32 %v1567_v39, %v1607_v0  ;;  %v1622_v34 = vmax.f32 %v1574_v43, %v1605_v14  ;;  %v1623_v24 = vmax.f32 %v1575_v53, %v1611_v45  ;;  %2181 = vrot.lane.b32.xlu0 %v2180_v23, %s2206_s14 }
 0x557   : > { %2176 = vrot.lane.b32.xlu1 %v2175_v31, %s2206_s14 }
 0x558   : > { %v2190_v29 = vpack.i.bf16 %v1623_v24, %v1615_v26  ;;  %v2185_v22 = vpack.i.bf16 %v1622_v34, %v1614_v33 }
 0x55a   : > { %2191 = vrot.lane.b32.xlu0 %v2190_v29, %s2206_s14 }
 0x55b   : > { %2186 = vrot.lane.b32.xlu1 %v2185_v22, %s2206_s14  ;;  %s2106_s14 = smul.u32 48, %s3742_s28 }
 0x55d   : > { %s305_s12 = scalar_lea.vmem %s3740_s8, %s2106_s14 }
 0x5c0   : > { %v2167_v25 = vpop.permute.xlu1 %2166 }
 0x5c1   : > { %v2169_v4 = vunpack.i.h.bf16 %v2167_v25  ;;  %v2168_v59 = vunpack.i.l.bf16 %v2167_v25 }
 0x5c3   : > { %v1650_v30 = vsel %vm381_vm13, %v2168_v59, %v2169_v4  ;;  %v1656_v43 = vsel %vm381_vm13, %v2169_v4, %v2168_v59 }
 0x5c4   : > { %v1664_v42 = vmax.f32 %v1616_v8, %v1650_v30  ;;  %v2172_v39 = vpop.permute.xlu0 %2171  ;;  %v1665_v53 = vmax.f32 %v1617_v61, %v1656_v43 }
 0x5c5   : > { %v2174_v35 = vunpack.i.h.bf16 %v2172_v39  ;;  %v2173_v54 = vunpack.i.l.bf16 %v2172_v39 }
 0x5c6   : > { %1778 = vmatprep.mubr.f32.mxu1 %v1665_v53 }
 0x5c7   : > { %1779 = vmatmul.mubr.f32.vlgmr.msra.gmra.mxu1 %v1664_v42  ;;  %v1657_v27 = vsel %vm381_vm13, %v2174_v35, %v2173_v54  ;;  %v1651_v63 = vsel %vm381_vm13, %v2173_v54, %v2174_v35 }
 0x5c8   : > { %v2182_v12 = vpop.permute.xlu0 %2181  ;;  %v1667_v40 = vmax.f32 %v1619_v49, %v1657_v27  ;;  %v1666_v46 = vmax.f32 %v3639_v3, %v1651_v63 }
 0x5c9   : > { %v2184_v47 = vunpack.i.h.bf16 %v2182_v12  ;;  %v2183_v60 = vunpack.i.l.bf16 %v2182_v12  ;;  %v2177_v56 = vpop.permute.xlu1 %2176 }
 0x5ca   : > { %v2179_v32 = vunpack.i.h.bf16 %v2177_v56  ;;  %v2178_v5 = vunpack.i.l.bf16 %v2177_v56  ;;  %1783 = vmatprep.mubr.f32.mxu1 %v1667_v40 }
 0x5cb   : > { %1784 = vmatmul.mubr.f32.gmra.mxu1 %v1666_v46 }
 0x5cc   : > { %v1648_v8 = vsel %vm381_vm13, %v2178_v5, %v2183_v60  ;;  %v2192_v61 = vpop.permute.xlu0 %2191  ;;  %v1654_v7 = vsel %vm381_vm13, %v2183_v60, %v2178_v5  ;;  %v1658_v52 = vsel %vm381_vm13, %v2184_v47, %v2179_v32  ;;  %v1652_v18 = vsel %vm381_vm13, %v2179_v32, %v2184_v47 }
 0x5cd   : > { %v1660_v2 = vmax.f32 %v3655_v20, %v1648_v8  ;;  %v2194_v19 = vunpack.i.h.bf16 %v2192_v61  ;;  %v2193_v6 = vunpack.i.l.bf16 %v2192_v61  ;;  %v2187_v62 = vpop.permute.xlu1 %2186  ;;  %v1661_v3 = vmax.f32 %v3659_v58, %v1654_v7 }
 0x5ce   : > { %v2189_v49 = vunpack.i.h.bf16 %v2187_v62  ;;  %v2188_v16 = vunpack.i.l.bf16 %v2187_v62  ;;  %v1669_v10 = vmax.f32 %v1621_v51, %v1658_v52  ;;  %v1668_v50 = vmax.f32 %v3663_v57, %v1652_v18 }
 0x5cf   : > { %1768 = vmatprep.mubr.f32.mxu0 %v1661_v3 }
 0x5d0   : > { %1788 = vmatprep.mubr.f32.mxu1 %v1669_v10  ;;  %1769 = vmatmul.mubr.f32.vlgmr.msra.gmra.mxu0 %v1660_v2  ;;  %v1655_v48 = vsel %vm381_vm13, %v2193_v6, %v2188_v16  ;;  %v1659_v1 = vsel %vm381_vm13, %v2194_v19, %v2189_v49  ;;  %v1649_v17 = vsel %vm381_vm13, %v2188_v16, %v2193_v6 }
 0x5d1   : > { %1789 = vmatmul.mubr.f32.gmra.mxu1 %v1668_v50  ;;  %v1663_v11 = vmax.f32 %v1615_v26, %v1655_v48  ;;  %v1671_v13 = vmax.f32 %v1623_v24, %v1659_v1  ;;  %v1662_v44 = vmax.f32 %v1614_v33, %v1649_v17  ;;  %v1653_v28 = vsel %vm381_vm13, %v2189_v49, %v2194_v19 }
 0x5d2   : > { %v1670_v36 = vmax.f32 %v1622_v34, %v1653_v28 }
 0x5d3   : > { %1773 = vmatprep.mubr.f32.mxu0 %v1663_v11  ;;  %1793 = vmatprep.mubr.f32.mxu1 %v1671_v13 }
 0x5d4   : > { %1774 = vmatmul.mubr.f32.gmra.mxu0 %v1662_v44 }
 0x5d5   : > { %1794 = vmatmul.mubr.f32.gmra.mxu1 %v1670_v36 }
 0x687   : > { %v2062_v20 = vpop.f32.mrf.mxu1 }
 0x689   : > { %v2063_v58 = vpop.f32.mrf.mxu1 }
 0x68a   : > { %v2064_v57 = vadd.f32 %v2063_v58, %v2062_v20 }
 0x68b   : > { %v2065_v51 = vpop.f32.mrf.mxu1 }
 0x68c   : > { %1802 = vst.msk [vmem:[%s305_s12 + $0x10] sm:$0xff] %vm1799_vm2, %v2064_v57 }
 0x68d   : > { %v2066_v15 = vpop.f32.mrf.mxu1 }
 0x68e   : > { %v2067_v9 = vadd.f32 %v2066_v15, %v2065_v51 }
 0x690   : > { %1803 = vst.msk [vmem:[%s305_s12 + $0x18] sm:$0xff] %vm1799_vm2, %v2067_v9  ;;  %v2056_v38 = vpop.f32.mrf.mxu0 }
 0x691   : > { %v2068_v41 = vpop.f32.mrf.mxu1 }
 0x692   : > { %v2057_v37 = vpop.f32.mrf.mxu0 }
 0x693   : > { %v2058_v21 = vadd.f32 %v2057_v37, %v2056_v38  ;;  %v2069_v23 = vpop.f32.mrf.mxu1 }
 0x694   : > { %v2070_v31 = vadd.f32 %v2069_v23, %v2068_v41  ;;  %v2059_v55 = vpop.f32.mrf.mxu0 }
 0x695   : > { %1800 = vst.msk [vmem:[%s305_s12] sm:$0xff] %vm1799_vm2, %v2058_v21  ;;  %v2071_v14 = vpop.f32.mrf.mxu1 }
 0x696   : > { %1804 = vst.msk [vmem:[%s305_s12 + $0x20] sm:$0xff] %vm1799_vm2, %v2070_v31  ;;  %v2060_v0 = vpop.f32.mrf.mxu0 }
 0x697   : > { %v2061_v45 = vadd.f32 %v2060_v0, %v2059_v55  ;;  %v2072_v33 = vpop.f32.mrf.mxu1 }
 0x698   : > { %v2073_v26 = vadd.f32 %v2072_v33, %v2071_v14 }
 0x699   : > { %1801 = vst.msk [vmem:[%s305_s12 + $0x8] sm:$0xff] %vm1799_vm2, %v2061_v45 }
 0x69a   : > { %1805 = vst.msk [vmem:[%s305_s12 + $0x28] sm:$0xff] %vm1799_vm2, %v2073_v26 }
 0x69b PF: > { %s18_s27 = sadd.s32 1, %s2201_s27  }
 0x69c   : > { %p15_p4 = scmp.ge.s32.totalorder %s18_s27, 4  }
 0x69e   :  { %17 = sbr.rel (!%p15_p4) target bundleno = 1 (0x1), region = 82 }

</bundles_post_ra>
